<compile_context>
chip_gen: v7x
topology: tpu7x:2x2x1
jax: 0.10.0
libtpu: 0.0.40
codegen_flags: <defaults>
</compile_context>

<pallas_src>
import functools

import numpy as np
import jax
import jax.numpy as jnp
from jax import lax
from jax.experimental import pallas as pl
from jax.experimental.pallas import tpu as pltpu

MODEL_DIM = 128
NUM_HEADS = 4
FFN_DIM = 256
NUM_LAYERS = 2
VOCAB_SIZE = 50
MAX_SEQ_LEN = 16
LN_EPS = 1e-5


def _layer_norm(h, gamma, beta):
    mu = jnp.mean(h, axis=-1, keepdims=True)
    var = jnp.mean(jnp.square(h - mu), axis=-1, keepdims=True)
    return (h - mu) * lax.rsqrt(var + LN_EPS) * gamma + beta


# ----------------------------- fused stack kernel ----------------------------


def encoder_stack_kernel(x0_ref, rep_ref, col_ref, scat_ref, bias_ref,
                         wqkv_ref, bqkv_ref, wo_ref, bo_ref,
                         g1_ref, be1_ref, w1_ref, b1_ref, w2_ref, b2_ref,
                         g2_ref, be2_ref,
                         out_ref, attn_ref,
                         *, dim_per_head):
    layer = pl.program_id(0)

    # Layer 0: seed the resident activation (out_ref stays in VMEM across the
    # whole layer grid because its block index never changes).
    @pl.when(layer == 0)
    def _():
        out_ref[...] = x0_ref[...]

    x = out_ref[...]                              # (BS, D) f32, previous layer output
    BS, D = x.shape
    dh = dim_per_head
    CPR = D // dh                                 # chunks per row (= num_heads)
    BIG = BS * CPR                                # = B * H * S entangled rows
    scale = float(dh) ** -0.5
    bf16 = jnp.bfloat16

    x_bf = x.astype(bf16)

    # ---- fused Q/K/V projection: one (BS,D)@(D,3D) bf16 MXU pass -------------
    qkv = jnp.dot(x_bf, wqkv_ref[...],
                  preferred_element_type=jnp.float32) + bqkv_ref[...]      # (BS, 3D) f32
    qkv_bf = qkv.astype(bf16)

    # ---- torch `.view(B*H, S, dh)` entanglement ------------------------------
    # Row replicate to the 64-space with a precomputed exact-0/1 bf16 one-hot.
    qkv_rep = jnp.dot(rep_ref[...], qkv_bf,
                      preferred_element_type=jnp.float32)                  # (BIG, 3D) f32

    scat = scat_ref[...]                          # (BIG, D) f32 lane-chunk one-hot

    def entangle(base):
        # entangled[r, m] = qkv[r // CPR, base + (r % CPR) * dh + m]
        sel = qkv_rep[:, base:base + D] * scat                             # (BIG, D)
        acc = sel[:, 0:dh]
        for c in range(1, CPR):
            acc = acc + sel[:, c * dh:(c + 1) * dh]
        return acc                                                          # (BIG, dh)

    q64 = entangle(0)
    k64 = entangle(D)
    v64 = entangle(2 * D)

    # ---- all B*H groups at once: block-diagonal (BIG, BIG) attention ---------
    s_big = lax.dot_general(q64.astype(bf16), k64.astype(bf16),
                            (((1,), (1,)), ((), ())),
                            preferred_element_type=jnp.float32) * scale
    s_big = s_big + bias_ref[...]                 # precomputed -inf mask bias
    m = jnp.max(s_big, axis=-1, keepdims=True)
    e = jnp.exp(s_big - m)
    p = e * pl.reciprocal(jnp.sum(e, axis=-1, keepdims=True), approx=True)
    attn_ref[...] = p                                                       # (BIG, BIG)

    ctx64 = jnp.dot(p.astype(bf16), v64.astype(bf16),
                    preferred_element_type=jnp.float32)                     # (BIG, dh)

    # ---- output projection: lane-scatter -> collapse -> single full-wo dot ---
    ctx_exp = jnp.concatenate([ctx64] * CPR, axis=1) * scat                 # (BIG, D)
    ctx_unv = jnp.dot(col_ref[...], ctx_exp.astype(bf16),
                      preferred_element_type=jnp.float32)                   # (BS, D)
    o = jnp.dot(ctx_unv.astype(bf16), wo_ref[...],
                preferred_element_type=jnp.float32) + bo_ref[...]

    # ---- residual + LayerNorm, FFN (Conv1d k=1 == Linear), residual + LN -----
    h = _layer_norm(x + o, g1_ref[...], be1_ref[...])
    h_bf = h.astype(bf16)
    f = jnp.dot(h_bf, w1_ref[...], preferred_element_type=jnp.float32) + b1_ref[...]
    f = jnp.maximum(f, 0.0)
    f = jnp.dot(f.astype(bf16), w2_ref[...],
                preferred_element_type=jnp.float32) + b2_ref[...]
    out_ref[...] = _layer_norm(h + f, g2_ref[...], be2_ref[...])


# ---------------------------------- wrapper -----------------------------------


def encoder_forward(tokens, inputs_len, params):
    B, S = tokens.shape
    D, H, F = MODEL_DIM, NUM_HEADS, FFN_DIM
    dh = D // H
    CPR = H
    G = B * H
    BIG = G * S
    BS = B * S

    # Embedding + positional encoding (glue, plain JAX).
    emb = jnp.take(params["seq_emb"], tokens, axis=0)                       # (B, S, D)
    positions = jnp.arange(1, S + 1, dtype=jnp.int32)[None, :]
    input_pos = jnp.where(positions <= inputs_len[:, None], positions, 0)
    pos_emb = jnp.take(params["pos_emb"], input_pos, axis=0)                # (B, S, D)
    x0 = (emb + pos_emb).reshape(BS, D)

    # ---- hoisted layer-invariant constants (computed once, resident in VMEM) --
    rows = np.arange(BIG)
    rep_mat = jnp.asarray(
        (np.arange(BS)[None, :] == rows[:, None] // CPR).astype(np.float32),
        dtype=jnp.bfloat16)                                                 # (BIG, BS)
    collapse = jnp.asarray(
        (rows[None, :] // CPR == np.arange(BS)[:, None]).astype(np.float32),
        dtype=jnp.bfloat16)                                                 # (BS, BIG)
    scat = jnp.asarray(
        (np.arange(D)[None, :] // dh == (rows[:, None] % CPR)).astype(np.float32),
        dtype=jnp.float32)                                                  # (BIG, D)

    # Additive attention-mask bias: -inf off the per-group block diagonal and on
    # padded key columns (torch `.repeat(num_heads,1,1)`: column 8*g+j -> pad[g%B, j]).
    pad = (tokens == 0)                                                     # (B, S) bool
    key_pad = pad[jnp.arange(G) % B].reshape(BIG)                           # (BIG,)
    rg = jnp.arange(BIG)[:, None] // S
    cg = jnp.arange(BIG)[None, :] // S
    bias = jnp.where((rg != cg) | key_pad[None, :],
                     jnp.float32(-jnp.inf), jnp.float32(0.0))               # (BIG, BIG)

    # ---- pre-cast large weights to bf16 (halves weight DMA) -------------------
    Lp = params["layers"]
    wqkv_bf = Lp["wqkv"].astype(jnp.bfloat16)
    wo_bf = Lp["wo"].astype(jnp.bfloat16)
    w1_bf = Lp["w1"].astype(jnp.bfloat16)
    w2_bf = Lp["w2"].astype(jnp.bfloat16)

    kernel = functools.partial(encoder_stack_kernel, dim_per_head=dh)

    out2, attn_big = pl.pallas_call(
        kernel,
        out_shape=(jax.ShapeDtypeStruct((BS, D), jnp.float32),
                   jax.ShapeDtypeStruct((NUM_LAYERS, BIG, BIG), jnp.float32)),
        grid=(NUM_LAYERS,),
        in_specs=[
            pl.BlockSpec((BS, D), lambda l: (0, 0)),           # initial activation
            pl.BlockSpec((BIG, BS), lambda l: (0, 0)),         # replicate one-hot (bf16)
            pl.BlockSpec((BS, BIG), lambda l: (0, 0)),         # collapse one-hot (bf16)
            pl.BlockSpec((BIG, D), lambda l: (0, 0)),          # lane-chunk scatter mask
            pl.BlockSpec((BIG, BIG), lambda l: (0, 0)),        # -inf mask bias
            pl.BlockSpec((None, D, 3 * D), lambda l: (l, 0, 0)),
            pl.BlockSpec((None, 1, 3 * D), lambda l: (l, 0, 0)),
            pl.BlockSpec((None, D, D), lambda l: (l, 0, 0)),
            pl.BlockSpec((None, 1, D), lambda l: (l, 0, 0)),
            pl.BlockSpec((None, 1, D), lambda l: (l, 0, 0)),
            pl.BlockSpec((None, 1, D), lambda l: (l, 0, 0)),
            pl.BlockSpec((None, D, F), lambda l: (l, 0, 0)),
            pl.BlockSpec((None, 1, F), lambda l: (l, 0, 0)),
            pl.BlockSpec((None, F, D), lambda l: (l, 0, 0)),
            pl.BlockSpec((None, 1, D), lambda l: (l, 0, 0)),
            pl.BlockSpec((None, 1, D), lambda l: (l, 0, 0)),
            pl.BlockSpec((None, 1, D), lambda l: (l, 0, 0)),
        ],
        out_specs=(pl.BlockSpec((BS, D), lambda l: (0, 0)),        # resident carry
                   pl.BlockSpec((None, BIG, BIG), lambda l: (l, 0, 0))),
        compiler_params=pltpu.CompilerParams(
            dimension_semantics=("arbitrary",)),                   # layers are sequential
    )(x0, rep_mat, collapse, scat, bias,
      wqkv_bf, Lp["bqkv"], wo_bf, Lp["bo"], Lp["ln1_g"], Lp["ln1_b"],
      w1_bf, Lp["b1"], w2_bf, Lp["b2"], Lp["ln2_g"], Lp["ln2_b"])

    output = out2.reshape(B, S, D)

    # Extract the per-group (S, S) block diagonal of each layer's (BIG, BIG) slab.
    idx = jnp.arange(G)
    attentions = []
    for l in range(NUM_LAYERS):
        a4 = attn_big[l].reshape(G, S, G, S)
        attentions.append(a4[idx, :, idx, :])                     # (B*H, S, S)
    return output, attentions


# --------------------------- pure-JAX reference -------------------------------


def encoder_forward_ref(tokens, inputs_len, params):
    B, S = tokens.shape
    D, H = MODEL_DIM, NUM_HEADS
    dh = D // H
    emb = jnp.take(params["seq_emb"], tokens, axis=0)
    positions = jnp.arange(1, S + 1, dtype=jnp.int32)[None, :]
    input_pos = jnp.where(positions <= inputs_len[:, None], positions, 0)
    x = (emb + jnp.take(params["pos_emb"], input_pos, axis=0)).reshape(B * S, D)
    pad = (tokens == 0)
    mask_bh = jnp.tile(jnp.broadcast_to(pad[:, None, :], (B, S, S)), (H, 1, 1))
    L = params["layers"]
    attns = []
    for l in range(NUM_LAYERS):
        qkv = x @ L["wqkv"][l] + L["bqkv"][l]
        q, k, v = jnp.split(qkv, 3, axis=-1)
        q = q.reshape(B * H, S, dh)
        k = k.reshape(B * H, S, dh)
        v = v.reshape(B * H, S, dh)
        s = jnp.einsum("gid,gjd->gij", q, k) * (float(dh) ** -0.5)
        s = jnp.where(mask_bh, -jnp.inf, s)
        p = jax.nn.softmax(s, axis=-1)
        attns.append(p)
        ctx = jnp.einsum("gij,gjd->gid", p, v).reshape(B * S, D)
        o = ctx @ L["wo"][l] + L["bo"][l]
        h = _layer_norm(x + o, L["ln1_g"][l], L["ln1_b"][l])
        f = jnp.maximum(h @ L["w1"][l] + L["b1"][l], 0.0)
        f = f @ L["w2"][l] + L["b2"][l]
        x = _layer_norm(h + f, L["ln2_g"][l], L["ln2_b"][l])
    return x.reshape(B, S, D), attns


# ---------------------------- parameter setup ---------------------------------


def positional_encoding_table(d_model, max_seq_len):
    pos = np.arange(max_seq_len, dtype=np.float64)[:, None]
    j = np.arange(d_model, dtype=np.float64)[None, :]
    angles = pos / np.power(10000.0, 2.0 * (j // 2) / d_model)
    pe = np.zeros((max_seq_len, d_model), dtype=np.float64)
    pe[:, 0::2] = np.sin(angles[:, 0::2])
    pe[:, 1::2] = np.cos(angles[:, 1::2])
    pe = np.concatenate([np.zeros((1, d_model)), pe], axis=0)     # pad row 0
    return jnp.asarray(pe, dtype=jnp.float32)


def init_params(key):
    D, F = MODEL_DIM, FFN_DIM
    keys = jax.random.split(key, 1 + NUM_LAYERS)
    seq_emb = jax.random.normal(keys[0], (VOCAB_SIZE + 1, D), jnp.float32) * 0.02
    seq_emb = seq_emb.at[0].set(0.0)          # nn.Embedding(padding_idx=0) -> zero row
    pos_emb = positional_encoding_table(D, MAX_SEQ_LEN)

    def lin(k, out_dim, in_dim):
        # torch nn.Linear / Conv1d(k=1) weight layout is (out, in); kernels use W^T.
        w = jax.random.normal(k, (out_dim, in_dim), jnp.float32) * 0.02
        return jnp.transpose(w)

    per_layer = []
    for lk in keys[1:]:
        ks = jax.random.split(lk, 8)
        wq, wk, wv = lin(ks[0], D, D), lin(ks[1], D, D), lin(ks[2], D, D)
        per_layer.append(dict(
            wqkv=jnp.concatenate([wq, wk, wv], axis=1),           # (D, 3D) fused Q|K|V
            bqkv=jnp.zeros((1, 3 * D), jnp.float32),
            wo=lin(ks[3], D, D), bo=jnp.zeros((1, D), jnp.float32),
            ln1_g=jnp.ones((1, D), jnp.float32), ln1_b=jnp.zeros((1, D), jnp.float32),
            # Conv1d(model_dim, ffn_dim, 1) == Linear(model_dim -> ffn_dim)
            w1=lin(ks[4], F, D), b1=jax.random.normal(ks[5], (1, F), jnp.float32) * 0.02,
            w2=lin(ks[6], D, F), b2=jax.random.normal(ks[7], (1, D), jnp.float32) * 0.02,
            ln2_g=jnp.ones((1, D), jnp.float32), ln2_b=jnp.zeros((1, D), jnp.float32),
        ))
    stacked = {k: jnp.stack([lp[k] for lp in per_layer], axis=0) for k in per_layer[0]}
    return dict(seq_emb=seq_emb, pos_emb=pos_emb, layers=stacked)


# ------------------------------------ main -------------------------------------


if __name__ == "__main__":
    key = jax.random.PRNGKey(0)
    k_tok, k_par = jax.random.split(key)

    B, S = 2, 8
    inputs_len = jnp.array([8, 6], dtype=jnp.int32)
    tokens = jax.random.randint(k_tok, (B, S), 1, VOCAB_SIZE + 1, dtype=jnp.int32)
    pos_idx = jnp.arange(1, S + 1, dtype=jnp.int32)[None, :]
    tokens = jnp.where(pos_idx <= inputs_len[:, None], tokens, 0)   # zero-pad past length

    params = init_params(k_par)
    output, attentions = encoder_forward(tokens, inputs_len, params)

    jax.block_until_ready(output)
    for a in attentions:
        jax.block_until_ready(a)

    # Validate against a pure-JAX f32 reference (bf16 MXU inputs -> loose tolerance).
    ref_out, ref_attns = encoder_forward_ref(tokens, inputs_len, params)
    np.testing.assert_allclose(np.asarray(output), np.asarray(ref_out),
                               rtol=3e-2, atol=3e-2)
    for a, ar in zip(attentions, ref_attns):
        np.testing.assert_allclose(np.asarray(a), np.asarray(ar),
                                   rtol=3e-2, atol=2e-2)

    assert output.shape == (B, S, MODEL_DIM)
    assert len(attentions) == NUM_LAYERS
    assert attentions[0].shape == (B * NUM_HEADS, S, S)
    assert bool(jnp.all(jnp.isfinite(output)))
    print("KERNEL_OK")
</pallas_src>

<mosaic_0001>
module attributes {stable_mosaic.version = 11 : i64} {
  func.func @encoder_stack_kernel(%arg0: i32, %arg1: memref<16x128xf32, #tpu.memory_space<vmem>>, %arg2: memref<64x16xbf16, #tpu.memory_space<vmem>>, %arg3: memref<16x64xbf16, #tpu.memory_space<vmem>>, %arg4: memref<64x128xf32, #tpu.memory_space<vmem>>, %arg5: memref<64x64xf32, #tpu.memory_space<vmem>>, %arg6: memref<1x128x384xbf16, #tpu.memory_space<vmem>>, %arg7: memref<1x1x384xf32, #tpu.memory_space<vmem>>, %arg8: memref<1x128x128xbf16, #tpu.memory_space<vmem>>, %arg9: memref<1x1x128xf32, #tpu.memory_space<vmem>>, %arg10: memref<1x1x128xf32, #tpu.memory_space<vmem>>, %arg11: memref<1x1x128xf32, #tpu.memory_space<vmem>>, %arg12: memref<1x128x256xbf16, #tpu.memory_space<vmem>>, %arg13: memref<1x1x256xf32, #tpu.memory_space<vmem>>, %arg14: memref<1x256x128xbf16, #tpu.memory_space<vmem>>, %arg15: memref<1x1x128xf32, #tpu.memory_space<vmem>>, %arg16: memref<1x1x128xf32, #tpu.memory_space<vmem>>, %arg17: memref<1x1x128xf32, #tpu.memory_space<vmem>>, %arg18: memref<16x128xf32, #tpu.memory_space<vmem>>, %arg19: memref<1x64x64xf32, #tpu.memory_space<vmem>>) attributes {dimension_semantics = [#tpu.dimension_semantics<arbitrary>], iteration_bounds = array<i64: 2>, scalar_prefetch = 0 : i64, scratch_operands = 0 : i64, tpu.core_type = #tpu.core_type<tc>, window_params = [{pipeline_mode = #tpu.pipeline_mode<synchronous>, transform_indices = @transform_0, window_bounds = array<i64: 16, 128>}, {pipeline_mode = #tpu.pipeline_mode<synchronous>, transform_indices = @transform_1, window_bounds = array<i64: 64, 16>}, {pipeline_mode = #tpu.pipeline_mode<synchronous>, transform_indices = @transform_2, window_bounds = array<i64: 16, 64>}, {pipeline_mode = #tpu.pipeline_mode<synchronous>, transform_indices = @transform_3, window_bounds = array<i64: 64, 128>}, {pipeline_mode = #tpu.pipeline_mode<synchronous>, transform_indices = @transform_4, window_bounds = array<i64: 64, 64>}, {transform_indices = @transform_5, window_bounds = array<i64: 1, 128, 384>}, {transform_indices = @transform_6, window_bounds = array<i64: 1, 1, 384>}, {transform_indices = @transform_7, window_bounds = array<i64: 1, 128, 128>}, {transform_indices = @transform_8, window_bounds = array<i64: 1, 1, 128>}, {transform_indices = @transform_9, window_bounds = array<i64: 1, 1, 128>}, {transform_indices = @transform_10, window_bounds = array<i64: 1, 1, 128>}, {transform_indices = @transform_11, window_bounds = array<i64: 1, 128, 256>}, {transform_indices = @transform_12, window_bounds = array<i64: 1, 1, 256>}, {transform_indices = @transform_13, window_bounds = array<i64: 1, 256, 128>}, {transform_indices = @transform_14, window_bounds = array<i64: 1, 1, 128>}, {transform_indices = @transform_15, window_bounds = array<i64: 1, 1, 128>}, {transform_indices = @transform_16, window_bounds = array<i64: 1, 1, 128>}, {pipeline_mode = #tpu.pipeline_mode<synchronous>, transform_indices = @transform_17, window_bounds = array<i64: 16, 128>}, {transform_indices = @transform_18, window_bounds = array<i64: 1, 64, 64>}]} {
    %c0_i32 = arith.constant 0 : i32
    %0 = arith.cmpi eq, %arg0, %c0_i32 : i32
    %1 = arith.extui %0 : i1 to i32
    %c0_i32_0 = arith.constant 0 : i32
    %2 = arith.cmpi ne, %1, %c0_i32_0 : i32
    scf.if %2 {
      %c0_72 = arith.constant 0 : index
      %c0_73 = arith.constant 0 : index
      %152 = vector.load %arg1[%c0_72, %c0_73] : memref<16x128xf32, #tpu.memory_space<vmem>>, vector<16x128xf32>
      %c0_74 = arith.constant 0 : index
      %c0_75 = arith.constant 0 : index
      %153 = vector.load %arg18[%c0_74, %c0_75] : memref<16x128xf32, #tpu.memory_space<vmem>>, vector<16x128xf32>
      tpu.vector_store %arg18[%c0_74, %c0_75], %152 {strides = array<i32>} : memref<16x128xf32, #tpu.memory_space<vmem>>, vector<16x128xf32>,
    } else {
    }
    %c0 = arith.constant 0 : index
    %c0_1 = arith.constant 0 : index
    %3 = vector.load %arg18[%c0, %c0_1] : memref<16x128xf32, #tpu.memory_space<vmem>>, vector<16x128xf32>
    %4 = arith.truncf %3 : vector<16x128xf32> to vector<16x128xbf16>
    %c0_2 = arith.constant 0 : index
    %c0_3 = arith.constant 0 : index
    %c0_4 = arith.constant 0 : index
    %5 = vector.load %arg6[%c0_2, %c0_3, %c0_4] : memref<1x128x384xbf16, #tpu.memory_space<vmem>>, vector<1x128x384xbf16>
    %6 = vector.shape_cast %5 : vector<1x128x384xbf16> to vector<128x384xbf16>
    %cst = arith.constant dense<0.000000e+00> : vector<16x384xf32>
    %7 = tpu.matmul %4, %6, %cst {dimension_numbers = #tpu.dot_dimension_numbers<[1], [0], [0], [1], [0, 0, 1, 1], [], []>} : vector<16x128xbf16>, vector<128x384xbf16>, vector<16x384xf32> -> vector<16x384xf32>
    %c0_5 = arith.constant 0 : index
    %c0_6 = arith.constant 0 : index
    %c0_7 = arith.constant 0 : index
    %8 = vector.load %arg7[%c0_5, %c0_6, %c0_7] : memref<1x1x384xf32, #tpu.memory_space<vmem>>, vector<1x1x384xf32>
    %9 = vector.shape_cast %8 : vector<1x1x384xf32> to vector<1x384xf32>
    %10 = vector.broadcast %9 : vector<1x384xf32> to vector<16x384xf32>
    %11 = arith.addf %7, %10 : vector<16x384xf32>
    %12 = arith.truncf %11 : vector<16x384xf32> to vector<16x384xbf16>
    %c0_8 = arith.constant 0 : index
    %c0_9 = arith.constant 0 : index
    %13 = vector.load %arg2[%c0_8, %c0_9] : memref<64x16xbf16, #tpu.memory_space<vmem>>, vector<64x16xbf16>
    %cst_10 = arith.constant dense<0.000000e+00> : vector<64x384xf32>
    %14 = tpu.matmul %13, %12, %cst_10 {dimension_numbers = #tpu.dot_dimension_numbers<[1], [0], [0], [1], [0, 0, 1, 1], [], []>} : vector<64x16xbf16>, vector<16x384xbf16>, vector<64x384xf32> -> vector<64x384xf32>
    %c0_11 = arith.constant 0 : index
    %c0_12 = arith.constant 0 : index
    %15 = vector.load %arg4[%c0_11, %c0_12] : memref<64x128xf32, #tpu.memory_space<vmem>>, vector<64x128xf32>
    %16 = vector.extract_strided_slice %14 {offsets = [0, 0], sizes = [64, 128], strides = [1, 1]} : vector<64x384xf32> to vector<64x128xf32>
    %17 = arith.mulf %16, %15 : vector<64x128xf32>
    %18 = vector.extract_strided_slice %17 {offsets = [0, 0], sizes = [64, 32], strides = [1, 1]} : vector<64x128xf32> to vector<64x32xf32>
    %19 = vector.extract_strided_slice %17 {offsets = [0, 32], sizes = [64, 32], strides = [1, 1]} : vector<64x128xf32> to vector<64x32xf32>
    %20 = arith.addf %18, %19 : vector<64x32xf32>
    %21 = vector.extract_strided_slice %17 {offsets = [0, 64], sizes = [64, 32], strides = [1, 1]} : vector<64x128xf32> to vector<64x32xf32>
    %22 = arith.addf %20, %21 : vector<64x32xf32>
    %23 = vector.extract_strided_slice %17 {offsets = [0, 96], sizes = [64, 32], strides = [1, 1]} : vector<64x128xf32> to vector<64x32xf32>
    %24 = arith.addf %22, %23 : vector<64x32xf32>
    %25 = vector.extract_strided_slice %14 {offsets = [0, 128], sizes = [64, 128], strides = [1, 1]} : vector<64x384xf32> to vector<64x128xf32>
    %26 = arith.mulf %25, %15 : vector<64x128xf32>
    %27 = vector.extract_strided_slice %26 {offsets = [0, 0], sizes = [64, 32], strides = [1, 1]} : vector<64x128xf32> to vector<64x32xf32>
    %28 = vector.extract_strided_slice %26 {offsets = [0, 32], sizes = [64, 32], strides = [1, 1]} : vector<64x128xf32> to vector<64x32xf32>
    %29 = arith.addf %27, %28 : vector<64x32xf32>
    %30 = vector.extract_strided_slice %26 {offsets = [0, 64], sizes = [64, 32], strides = [1, 1]} : vector<64x128xf32> to vector<64x32xf32>
    %31 = arith.addf %29, %30 : vector<64x32xf32>
    %32 = vector.extract_strided_slice %26 {offsets = [0, 96], sizes = [64, 32], strides = [1, 1]} : vector<64x128xf32> to vector<64x32xf32>
    %33 = arith.addf %31, %32 : vector<64x32xf32>
    %34 = vector.extract_strided_slice %14 {offsets = [0, 256], sizes = [64, 128], strides = [1, 1]} : vector<64x384xf32> to vector<64x128xf32>
    %35 = arith.mulf %34, %15 : vector<64x128xf32>
    %36 = vector.extract_strided_slice %35 {offsets = [0, 0], sizes = [64, 32], strides = [1, 1]} : vector<64x128xf32> to vector<64x32xf32>
    %37 = vector.extract_strided_slice %35 {offsets = [0, 32], sizes = [64, 32], strides = [1, 1]} : vector<64x128xf32> to vector<64x32xf32>
    %38 = arith.addf %36, %37 : vector<64x32xf32>
    %39 = vector.extract_strided_slice %35 {offsets = [0, 64], sizes = [64, 32], strides = [1, 1]} : vector<64x128xf32> to vector<64x32xf32>
    %40 = arith.addf %38, %39 : vector<64x32xf32>
    %41 = vector.extract_strided_slice %35 {offsets = [0, 96], sizes = [64, 32], strides = [1, 1]} : vector<64x128xf32> to vector<64x32xf32>
    %42 = arith.addf %40, %41 : vector<64x32xf32>
    %43 = arith.truncf %24 : vector<64x32xf32> to vector<64x32xbf16>
    %44 = arith.truncf %33 : vector<64x32xf32> to vector<64x32xbf16>
    %cst_13 = arith.constant dense<0.000000e+00> : vector<64x64xf32>
    %45 = tpu.matmul %43, %44, %cst_13 {dimension_numbers = #tpu.dot_dimension_numbers<[1], [1], [0], [0], [0, 0, 1, 0], [], []>} : vector<64x32xbf16>, vector<64x32xbf16>, vector<64x64xf32> -> vector<64x64xf32>
    %cst_14 = arith.constant 0.176776692 : f32
    %46 = vector.broadcast %cst_14 : f32 to vector<64x64xf32>
    %47 = arith.mulf %45, %46 : vector<64x64xf32>
    %c0_15 = arith.constant 0 : index
    %c0_16 = arith.constant 0 : index
    %48 = vector.load %arg5[%c0_15, %c0_16] : memref<64x64xf32, #tpu.memory_space<vmem>>, vector<64x64xf32>
    %49 = arith.addf %47, %48 : vector<64x64xf32>
    %cst_17 = arith.constant dense<0xFF800000> : vector<64xf32>
    %50 = vector.multi_reduction <maximumf>, %49, %cst_17 [1] : vector<64x64xf32> to vector<64xf32>
    %51 = vector.shape_cast %50 : vector<64xf32> to vector<64x1xf32>
    %52 = vector.broadcast %51 : vector<64x1xf32> to vector<64x64xf32>
    %53 = arith.subf %49, %52 : vector<64x64xf32>
    %54 = math.exp %53 : vector<64x64xf32>
    %cst_18 = arith.constant dense<0.000000e+00> : vector<64xf32>
    %55 = vector.multi_reduction <add>, %54, %cst_18 [1] : vector<64x64xf32> to vector<64xf32>
    %56 = vector.shape_cast %55 : vector<64xf32> to vector<64x1xf32>
    %57 = tpu.reciprocal %56 {approx = true} : vector<64x1xf32> -> vector<64x1xf32>
    %58 = vector.broadcast %57 : vector<64x1xf32> to vector<64x64xf32>
    %59 = arith.mulf %54, %58 : vector<64x64xf32>
    %c0_19 = arith.constant 0 : index
    %c0_20 = arith.constant 0 : index
    %c0_21 = arith.constant 0 : index
    %60 = vector.load %arg19[%c0_19, %c0_20, %c0_21] : memref<1x64x64xf32, #tpu.memory_space<vmem>>, vector<1x64x64xf32>
    %61 = vector.shape_cast %60 : vector<1x64x64xf32> to vector<64x64xf32>
    %62 = vector.shape_cast %59 : vector<64x64xf32> to vector<1x64x64xf32>
    tpu.vector_store %arg19[%c0_19, %c0_20, %c0_21], %62 {strides = array<i32>} : memref<1x64x64xf32, #tpu.memory_space<vmem>>, vector<1x64x64xf32>,
    %63 = arith.truncf %59 : vector<64x64xf32> to vector<64x64xbf16>
    %64 = arith.truncf %42 : vector<64x32xf32> to vector<64x32xbf16>
    %cst_22 = arith.constant dense<0.000000e+00> : vector<64x32xf32>
    %65 = tpu.matmul %63, %64, %cst_22 {dimension_numbers = #tpu.dot_dimension_numbers<[1], [0], [0], [1], [0, 0, 1, 1], [], []>} : vector<64x64xbf16>, vector<64x32xbf16>, vector<64x32xf32> -> vector<64x32xf32>
    %66 = tpu.concatenate %65, %65, %65, %65 in 1 : vector<64x32xf32>, vector<64x32xf32>, vector<64x32xf32>, vector<64x32xf32> -> vector<64x128xf32>
    %67 = arith.mulf %66, %15 : vector<64x128xf32>
    %c0_23 = arith.constant 0 : index
    %c0_24 = arith.constant 0 : index
    %68 = vector.load %arg3[%c0_23, %c0_24] : memref<16x64xbf16, #tpu.memory_space<vmem>>, vector<16x64xbf16>
    %69 = arith.truncf %67 : vector<64x128xf32> to vector<64x128xbf16>
    %cst_25 = arith.constant dense<0.000000e+00> : vector<16x128xf32>
    %70 = tpu.matmul %68, %69, %cst_25 {dimension_numbers = #tpu.dot_dimension_numbers<[1], [0], [0], [1], [0, 0, 1, 1], [], []>} : vector<16x64xbf16>, vector<64x128xbf16>, vector<16x128xf32> -> vector<16x128xf32>
    %71 = arith.truncf %70 : vector<16x128xf32> to vector<16x128xbf16>
    %c0_26 = arith.constant 0 : index
    %c0_27 = arith.constant 0 : index
    %c0_28 = arith.constant 0 : index
    %72 = vector.load %arg8[%c0_26, %c0_27, %c0_28] : memref<1x128x128xbf16, #tpu.memory_space<vmem>>, vector<1x128x128xbf16>
    %73 = vector.shape_cast %72 : vector<1x128x128xbf16> to vector<128x128xbf16>
    %cst_29 = arith.constant dense<0.000000e+00> : vector<16x128xf32>
    %74 = tpu.matmul %71, %73, %cst_29 {dimension_numbers = #tpu.dot_dimension_numbers<[1], [0], [0], [1], [0, 0, 1, 1], [], []>} : vector<16x128xbf16>, vector<128x128xbf16>, vector<16x128xf32> -> vector<16x128xf32>
    %c0_30 = arith.constant 0 : index
    %c0_31 = arith.constant 0 : index
    %c0_32 = arith.constant 0 : index
    %75 = vector.load %arg9[%c0_30, %c0_31, %c0_32] : memref<1x1x128xf32, #tpu.memory_space<vmem>>, vector<1x1x128xf32>
    %76 = vector.shape_cast %75 : vector<1x1x128xf32> to vector<1x128xf32>
    %77 = vector.broadcast %76 : vector<1x128xf32> to vector<16x128xf32>
    %78 = arith.addf %74, %77 : vector<16x128xf32>
    %79 = arith.addf %3, %78 : vector<16x128xf32>
    %c0_33 = arith.constant 0 : index
    %c0_34 = arith.constant 0 : index
    %c0_35 = arith.constant 0 : index
    %80 = vector.load %arg10[%c0_33, %c0_34, %c0_35] : memref<1x1x128xf32, #tpu.memory_space<vmem>>, vector<1x1x128xf32>
    %81 = vector.shape_cast %80 : vector<1x1x128xf32> to vector<1x128xf32>
    %c0_36 = arith.constant 0 : index
    %c0_37 = arith.constant 0 : index
    %c0_38 = arith.constant 0 : index
    %82 = vector.load %arg11[%c0_36, %c0_37, %c0_38] : memref<1x1x128xf32, #tpu.memory_space<vmem>>, vector<1x1x128xf32>
    %83 = vector.shape_cast %82 : vector<1x1x128xf32> to vector<1x128xf32>
    %cst_39 = arith.constant dense<0.000000e+00> : vector<16xf32>
    %84 = vector.multi_reduction <add>, %79, %cst_39 [1] : vector<16x128xf32> to vector<16xf32>
    %85 = vector.shape_cast %84 : vector<16xf32> to vector<16x1xf32>
    %cst_40 = arith.constant 1.280000e+02 : f32
    %86 = vector.broadcast %cst_40 : f32 to vector<16x1xf32>
    %87 = arith.divf %85, %86 : vector<16x1xf32>
    %88 = vector.broadcast %87 : vector<16x1xf32> to vector<16x128xf32>
    %89 = arith.subf %79, %88 : vector<16x128xf32>
    %90 = arith.mulf %89, %89 : vector<16x128xf32>
    %cst_41 = arith.constant dense<0.000000e+00> : vector<16xf32>
    %91 = vector.multi_reduction <add>, %90, %cst_41 [1] : vector<16x128xf32> to vector<16xf32>
    %92 = vector.shape_cast %91 : vector<16xf32> to vector<16x1xf32>
    %cst_42 = arith.constant 1.280000e+02 : f32
    %93 = vector.broadcast %cst_42 : f32 to vector<16x1xf32>
    %94 = arith.divf %92, %93 : vector<16x1xf32>
    %95 = vector.broadcast %87 : vector<16x1xf32> to vector<16x128xf32>
    %96 = arith.subf %79, %95 : vector<16x128xf32>
    %cst_43 = arith.constant 9.99999974E-6 : f32
    %97 = vector.broadcast %cst_43 : f32 to vector<16x1xf32>
    %98 = arith.addf %94, %97 : vector<16x1xf32>
    %99 = math.rsqrt %98 : vector<16x1xf32>
    %100 = vector.broadcast %99 : vector<16x1xf32> to vector<16x128xf32>
    %101 = arith.mulf %96, %100 : vector<16x128xf32>
    %102 = vector.broadcast %81 : vector<1x128xf32> to vector<16x128xf32>
    %103 = arith.mulf %101, %102 : vector<16x128xf32>
    %104 = vector.broadcast %83 : vector<1x128xf32> to vector<16x128xf32>
    %105 = arith.addf %103, %104 : vector<16x128xf32>
    %106 = arith.truncf %105 : vector<16x128xf32> to vector<16x128xbf16>
    %c0_44 = arith.constant 0 : index
    %c0_45 = arith.constant 0 : index
    %c0_46 = arith.constant 0 : index
    %107 = vector.load %arg12[%c0_44, %c0_45, %c0_46] : memref<1x128x256xbf16, #tpu.memory_space<vmem>>, vector<1x128x256xbf16>
    %108 = vector.shape_cast %107 : vector<1x128x256xbf16> to vector<128x256xbf16>
    %cst_47 = arith.constant dense<0.000000e+00> : vector<16x256xf32>
    %109 = tpu.matmul %106, %108, %cst_47 {dimension_numbers = #tpu.dot_dimension_numbers<[1], [0], [0], [1], [0, 0, 1, 1], [], []>} : vector<16x128xbf16>, vector<128x256xbf16>, vector<16x256xf32> -> vector<16x256xf32>
    %c0_48 = arith.constant 0 : index
    %c0_49 = arith.constant 0 : index
    %c0_50 = arith.constant 0 : index
    %110 = vector.load %arg13[%c0_48, %c0_49, %c0_50] : memref<1x1x256xf32, #tpu.memory_space<vmem>>, vector<1x1x256xf32>
    %111 = vector.shape_cast %110 : vector<1x1x256xf32> to vector<1x256xf32>
    %112 = vector.broadcast %111 : vector<1x256xf32> to vector<16x256xf32>
    %113 = arith.addf %109, %112 : vector<16x256xf32>
    %cst_51 = arith.constant 0.000000e+00 : f32
    %114 = vector.broadcast %cst_51 : f32 to vector<16x256xf32>
    %115 = arith.maximumf %113, %114 : vector<16x256xf32>
    %116 = arith.truncf %115 : vector<16x256xf32> to vector<16x256xbf16>
    %c0_52 = arith.constant 0 : index
    %c0_53 = arith.constant 0 : index
    %c0_54 = arith.constant 0 : index
    %117 = vector.load %arg14[%c0_52, %c0_53, %c0_54] : memref<1x256x128xbf16, #tpu.memory_space<vmem>>, vector<1x256x128xbf16>
    %118 = vector.shape_cast %117 : vector<1x256x128xbf16> to vector<256x128xbf16>
    %cst_55 = arith.constant dense<0.000000e+00> : vector<16x128xf32>
    %119 = tpu.matmul %116, %118, %cst_55 {dimension_numbers = #tpu.dot_dimension_numbers<[1], [0], [0], [1], [0, 0, 1, 1], [], []>} : vector<16x256xbf16>, vector<256x128xbf16>, vector<16x128xf32> -> vector<16x128xf32>
    %c0_56 = arith.constant 0 : index
    %c0_57 = arith.constant 0 : index
    %c0_58 = arith.constant 0 : index
    %120 = vector.load %arg15[%c0_56, %c0_57, %c0_58] : memref<1x1x128xf32, #tpu.memory_space<vmem>>, vector<1x1x128xf32>
    %121 = vector.shape_cast %120 : vector<1x1x128xf32> to vector<1x128xf32>
    %122 = vector.broadcast %121 : vector<1x128xf32> to vector<16x128xf32>
    %123 = arith.addf %119, %122 : vector<16x128xf32>
    %124 = arith.addf %105, %123 : vector<16x128xf32>
    %c0_59 = arith.constant 0 : index
    %c0_60 = arith.constant 0 : index
    %c0_61 = arith.constant 0 : index
    %125 = vector.load %arg16[%c0_59, %c0_60, %c0_61] : memref<1x1x128xf32, #tpu.memory_space<vmem>>, vector<1x1x128xf32>
    %126 = vector.shape_cast %125 : vector<1x1x128xf32> to vector<1x128xf32>
    %c0_62 = arith.constant 0 : index
    %c0_63 = arith.constant 0 : index
    %c0_64 = arith.constant 0 : index
    %127 = vector.load %arg17[%c0_62, %c0_63, %c0_64] : memref<1x1x128xf32, #tpu.memory_space<vmem>>, vector<1x1x128xf32>
    %128 = vector.shape_cast %127 : vector<1x1x128xf32> to vector<1x128xf32>
    %cst_65 = arith.constant dense<0.000000e+00> : vector<16xf32>
    %129 = vector.multi_reduction <add>, %124, %cst_65 [1] : vector<16x128xf32> to vector<16xf32>
    %130 = vector.shape_cast %129 : vector<16xf32> to vector<16x1xf32>
    %cst_66 = arith.constant 1.280000e+02 : f32
    %131 = vector.broadcast %cst_66 : f32 to vector<16x1xf32>
    %132 = arith.divf %130, %131 : vector<16x1xf32>
    %133 = vector.broadcast %132 : vector<16x1xf32> to vector<16x128xf32>
    %134 = arith.subf %124, %133 : vector<16x128xf32>
    %135 = arith.mulf %134, %134 : vector<16x128xf32>
    %cst_67 = arith.constant dense<0.000000e+00> : vector<16xf32>
    %136 = vector.multi_reduction <add>, %135, %cst_67 [1] : vector<16x128xf32> to vector<16xf32>
    %137 = vector.shape_cast %136 : vector<16xf32> to vector<16x1xf32>
    %cst_68 = arith.constant 1.280000e+02 : f32
    %138 = vector.broadcast %cst_68 : f32 to vector<16x1xf32>
    %139 = arith.divf %137, %138 : vector<16x1xf32>
    %140 = vector.broadcast %132 : vector<16x1xf32> to vector<16x128xf32>
    %141 = arith.subf %124, %140 : vector<16x128xf32>
    %cst_69 = arith.constant 9.99999974E-6 : f32
    %142 = vector.broadcast %cst_69 : f32 to vector<16x1xf32>
    %143 = arith.addf %139, %142 : vector<16x1xf32>
    %144 = math.rsqrt %143 : vector<16x1xf32>
    %145 = vector.broadcast %144 : vector<16x1xf32> to vector<16x128xf32>
    %146 = arith.mulf %141, %145 : vector<16x128xf32>
    %147 = vector.broadcast %126 : vector<1x128xf32> to vector<16x128xf32>
    %148 = arith.mulf %146, %147 : vector<16x128xf32>
    %149 = vector.broadcast %128 : vector<1x128xf32> to vector<16x128xf32>
    %150 = arith.addf %148, %149 : vector<16x128xf32>
    %c0_70 = arith.constant 0 : index
    %c0_71 = arith.constant 0 : index
    %151 = vector.load %arg18[%c0_70, %c0_71] : memref<16x128xf32, #tpu.memory_space<vmem>>, vector<16x128xf32>
    tpu.vector_store %arg18[%c0_70, %c0_71], %150 {strides = array<i32>} : memref<16x128xf32, #tpu.memory_space<vmem>>, vector<16x128xf32>,
    return
  }
  func.func @transform_0(%arg0: i32) -> (i32, i32) {
    %c0_i32 = arith.constant 0 : i32
    %c0_i32_0 = arith.constant 0 : i32
    %c0_i32_1 = arith.constant 0 : i32
    return %c0_i32, %c0_i32_0 : i32, i32
  }
  func.func @transform_1(%arg0: i32) -> (i32, i32) {
    %c0_i32 = arith.constant 0 : i32
    %c0_i32_0 = arith.constant 0 : i32
    %c0_i32_1 = arith.constant 0 : i32
    return %c0_i32, %c0_i32_0 : i32, i32
  }
  func.func @transform_2(%arg0: i32) -> (i32, i32) {
    %c0_i32 = arith.constant 0 : i32
    %c0_i32_0 = arith.constant 0 : i32
    %c0_i32_1 = arith.constant 0 : i32
    return %c0_i32, %c0_i32_0 : i32, i32
  }
  func.func @transform_3(%arg0: i32) -> (i32, i32) {
    %c0_i32 = arith.constant 0 : i32
    %c0_i32_0 = arith.constant 0 : i32
    %c0_i32_1 = arith.constant 0 : i32
    return %c0_i32, %c0_i32_0 : i32, i32
  }
  func.func @transform_4(%arg0: i32) -> (i32, i32) {
    %c0_i32 = arith.constant 0 : i32
    %c0_i32_0 = arith.constant 0 : i32
    %c0_i32_1 = arith.constant 0 : i32
    return %c0_i32, %c0_i32_0 : i32, i32
  }
  func.func @transform_5(%arg0: i32) -> (i32, i32, i32) {
    %c0_i32 = arith.constant 0 : i32
    %c0_i32_0 = arith.constant 0 : i32
    %c0_i32_1 = arith.constant 0 : i32
    return %arg0, %c0_i32, %c0_i32_0 : i32, i32, i32
  }
  func.func @transform_6(%arg0: i32) -> (i32, i32, i32) {
    %c0_i32 = arith.constant 0 : i32
    %c0_i32_0 = arith.constant 0 : i32
    %c0_i32_1 = arith.constant 0 : i32
    return %arg0, %c0_i32, %c0_i32_0 : i32, i32, i32
  }
  func.func @transform_7(%arg0: i32) -> (i32, i32, i32) {
    %c0_i32 = arith.constant 0 : i32
    %c0_i32_0 = arith.constant 0 : i32
    %c0_i32_1 = arith.constant 0 : i32
    return %arg0, %c0_i32, %c0_i32_0 : i32, i32, i32
  }
  func.func @transform_8(%arg0: i32) -> (i32, i32, i32) {
    %c0_i32 = arith.constant 0 : i32
    %c0_i32_0 = arith.constant 0 : i32
    %c0_i32_1 = arith.constant 0 : i32
    return %arg0, %c0_i32, %c0_i32_0 : i32, i32, i32
  }
  func.func @transform_9(%arg0: i32) -> (i32, i32, i32) {
    %c0_i32 = arith.constant 0 : i32
    %c0_i32_0 = arith.constant 0 : i32
    %c0_i32_1 = arith.constant 0 : i32
    return %arg0, %c0_i32, %c0_i32_0 : i32, i32, i32
  }
  func.func @transform_10(%arg0: i32) -> (i32, i32, i32) {
    %c0_i32 = arith.constant 0 : i32
    %c0_i32_0 = arith.constant 0 : i32
    %c0_i32_1 = arith.constant 0 : i32
    return %arg0, %c0_i32, %c0_i32_0 : i32, i32, i32
  }
  func.func @transform_11(%arg0: i32) -> (i32, i32, i32) {
    %c0_i32 = arith.constant 0 : i32
    %c0_i32_0 = arith.constant 0 : i32
    %c0_i32_1 = arith.constant 0 : i32
    return %arg0, %c0_i32, %c0_i32_0 : i32, i32, i32
  }
  func.func @transform_12(%arg0: i32) -> (i32, i32, i32) {
    %c0_i32 = arith.constant 0 : i32
    %c0_i32_0 = arith.constant 0 : i32
    %c0_i32_1 = arith.constant 0 : i32
    return %arg0, %c0_i32, %c0_i32_0 : i32, i32, i32
  }
  func.func @transform_13(%arg0: i32) -> (i32, i32, i32) {
    %c0_i32 = arith.constant 0 : i32
    %c0_i32_0 = arith.constant 0 : i32
    %c0_i32_1 = arith.constant 0 : i32
    return %arg0, %c0_i32, %c0_i32_0 : i32, i32, i32
  }
  func.func @transform_14(%arg0: i32) -> (i32, i32, i32) {
    %c0_i32 = arith.constant 0 : i32
    %c0_i32_0 = arith.constant 0 : i32
    %c0_i32_1 = arith.constant 0 : i32
    return %arg0, %c0_i32, %c0_i32_0 : i32, i32, i32
  }
  func.func @transform_15(%arg0: i32) -> (i32, i32, i32) {
    %c0_i32 = arith.constant 0 : i32
    %c0_i32_0 = arith.constant 0 : i32
    %c0_i32_1 = arith.constant 0 : i32
    return %arg0, %c0_i32, %c0_i32_0 : i32, i32, i32
  }
  func.func @transform_16(%arg0: i32) -> (i32, i32, i32) {
    %c0_i32 = arith.constant 0 : i32
    %c0_i32_0 = arith.constant 0 : i32
    %c0_i32_1 = arith.constant 0 : i32
    return %arg0, %c0_i32, %c0_i32_0 : i32, i32, i32
  }
  func.func @transform_17(%arg0: i32) -> (i32, i32) {
    %c0_i32 = arith.constant 0 : i32
    %c0_i32_0 = arith.constant 0 : i32
    %c0_i32_1 = arith.constant 0 : i32
    return %c0_i32, %c0_i32_0 : i32, i32
  }
  func.func @transform_18(%arg0: i32) -> (i32, i32, i32) {
    %c0_i32 = arith.constant 0 : i32
    %c0_i32_0 = arith.constant 0 : i32
    %c0_i32_1 = arith.constant 0 : i32
    return %arg0, %c0_i32, %c0_i32_0 : i32, i32, i32
  }
}

</mosaic_0001>

<bundles_post_ra>
// kernel: tpu_custom_call.1
= control target key start
LH: loop header
LB: loop body
LE: loop exit
PB: predicated region body
PF: predicated region fallthrough
CT: control target
= control target key end

     0   :  { %s4869_s0 = inlined_call_operand.vmem [shape: f32[16,128], index: 0, kind: input, shape index: {}]   ;;  %s4870_s1 = inlined_call_operand.vmem [shape: bf16[64,16], index: 1, kind: input, shape index: {}]   ;;  %s4871_s2 = inlined_call_operand.vmem [shape: bf16[16,64], index: 2, kind: input, shape index: {}]   ;;  %s4872_s3 = inlined_call_operand.hbm [shape: f32[64,128], index: 3, kind: input, shape index: {}]   ;;  %s4873_s4 = inlined_call_operand.hbm [shape: f32[64,64], index: 4, kind: input, shape index: {}]   ;;  %s4874_s5 = inlined_call_operand.hbm [shape: bf16[2,128,384], index: 5, kind: input, shape index: {}]   ;;  %s4875_s6 = inlined_call_operand.vmem [shape: f32[2,1,384], index: 6, kind: input, shape index: {}]   ;;  %s4876_s7 = inlined_call_operand.hbm [shape: bf16[2,128,128], index: 7, kind: input, shape index: {}]   ;;  %s4877_s8 = inlined_call_operand.vmem [shape: f32[2,1,128], index: 8, kind: input, shape index: {}]   ;;  %s4878_s9 = inlined_call_operand.vmem [shape: f32[2,1,128], index: 9, kind: input, shape index: {}]   ;;  %s4879_s10 = inlined_call_operand.vmem [shape: f32[2,1,128], index: 10, kind: input, shape index: {}]   ;;  %s4880_s11 = inlined_call_operand.hbm [shape: bf16[2,128,256], index: 11, kind: input, shape index: {}]   ;;  %s4881_s12 = inlined_call_operand.vmem [shape: f32[2,1,256], index: 12, kind: input, shape index: {}]   ;;  %s4882_s13 = inlined_call_operand.hbm [shape: bf16[2,256,128], index: 13, kind: input, shape index: {}]   ;;  %s4883_s14 = inlined_call_operand.vmem [shape: f32[2,1,128], index: 14, kind: input, shape index: {}]   ;;  %s4884_s15 = inlined_call_operand.vmem [shape: f32[2,1,128], index: 15, kind: input, shape index: {}]   ;;  %s4885_s16 = inlined_call_operand.vmem [shape: f32[2,1,128], index: 16, kind: input, shape index: {}]   ;;  %s4886_s17 = inlined_call_operand.hbm [shape: f32[16,128], index: 17, kind: output, shape index: {0}]   ;;  %s4887_s18 = inlined_call_operand.hbm [shape: f32[2,64,64], index: 18, kind: output, shape index: {1}]  }
   0x1   :  { %4918 = sst [smem:[#allocation26_spill]] %s4869_s0 }
   0x2   :  { %4919 = sst [smem:[#allocation27_spill]] %s4870_s1 }
   0x3   :  { %4920 = sst [smem:[#allocation28_spill]] %s4871_s2 }
   0x4   :  { %4921 = sst [smem:[#allocation29_spill]] %s4872_s3 }
   0x5   :  { %4922 = sst [smem:[#allocation30_spill]] %s4873_s4 }
   0x6   :  { %4923 = sst [smem:[#allocation31_spill]] %s4874_s5 }
   0x7   :  { %4924 = sst [smem:[#allocation32_spill]] %s4875_s6 }
   0x8   :  { %4925 = sst [smem:[#allocation33_spill]] %s4876_s7 }
   0x9   :  { %4926 = sst [smem:[#allocation34_spill]] %s4880_s11 }
   0xa   :  { %4927 = sst [smem:[#allocation35_spill]] %s4881_s12 }
   0xb   :  { %4928 = sst [smem:[#allocation36_spill]] %s4882_s13 }
   0xc   :  { %4929 = sst [smem:[#allocation37_spill]] %s4883_s14 }
   0xd   :  { %4930 = sst [smem:[#allocation38_spill]] %s4884_s15 }
   0xe   :  { %4931 = sst [smem:[#allocation39_spill]] %s4885_s16 }
   0xf   :  { %4932 = sst [smem:[#allocation40_spill]] %s4886_s17 }
  0x10   :  { %4933 = sst [smem:[#allocation41_spill]] %s4887_s18 }
  0x11   :  { %24 = vsyncpa [#allocation3], 0 }
  0x12   :  { %25 = vsyncpa [#allocation6], 0 }
  0x13   :  { %26 = vsyncpa [#allocation4], 0 }
  0x14   :  { %27 = vsyncpa [#allocation13], 0 }
  0x15   :  { %29 = vsyncpa [#allocation13 + $0x1], 0  ;;  %s3854_s27 = smov 0   ;;  %s3856_s28 = smov 0  }
  0x16   :  { %s3858_s29 = smov 0   ;;  %s3860_s30 = smov 0  }
  0x17 LB: > { %4934 = sst [smem:[#allocation19_spill]] %s3723_s27  ;;  %s3875_s0 = sadd.s32 4294967295, %s3735_s30   ;;  %s3735_s30 = sphi %s3860_s30, %s5003_s30   ;;  %s3731_s29 = sphi %s3858_s29, %s5006_s29   ;;  %s3727_s28 = sphi %s3856_s28, %s5005_s28   ;;  %s3723_s27 = sphi %s3854_s27, %s5004_s27  }
  0x18   : > { %4935 = sst [smem:[#allocation20_spill]] %s3727_s28  ;;  %s2924_s19 = sadd.s32 4294967294, %s3735_s30  }
  0x19   : > { %4936 = sst [smem:[#allocation21_spill]] %s3731_s29  ;;  %s3879_s1 = sadd.s32 1, %s3735_s30  }
  0x1a   : > { %4937 = sst [smem:[#allocation22_spill]] %s3879_s1  ;;  %s147_s20 = sadd.s32 1, %s3731_s29 }
  0x1b   : > { %s144_s21 = ssub.s32 %s3735_s30, %s3879_s1  ;;  %p154_p0 = scmp.ne.s32.totalorder %s3731_s29, %s3727_s28 }
  0x1c   : > { %p145_p1 = scmp.eq.s32.totalorder %s144_s21, 0  ;;  %p155_p2 = scmp.eq.s32.totalorder %s3735_s30, 0 }
  0x1d   : > { %p160_p3 = scmp.ne.s32.totalorder %s3727_s28, %s3723_s27  ;;  %p4899_p4 = scmp.eq.s32.totalorder %s3875_s0, 0 }
  0x1e   : > { %s3891_s22 = scalar_select %p145_p1, %s3731_s29, %s147_s20  }
  0x1f   : > { %p3893_p5 = por %p155_p2, %p154_p0  ;;  %p3899_p6 = por %p4899_p4, %p160_p3 }
  0x20   : > { %4938 = sst [smem:[#allocation23_spill]] %s3891_s22  ;;  %p4896_p7 = scmp.eq.s32.totalorder %s3875_s0, 1 }
  0x21   : > { %s4939_s2 = scalar_select %p3893_p5, 1, 0 }
  0x22   : > { %s4940_s23 = scalar_select %p3899_p6, 1, 0 }
  0x23   : > { %p497_p8 = scmp.eq.s32.totalorder %s2924_s19, 1  ;;  %p2925_p9 = scmp.ge.s32.totalorder %s3735_s30, 1 }
  0x24   : > { %p504_p10 = scmp.lt.s32.totalorder %s3735_s30, 3  ;;  %p3908_p11 = por %p4896_p7, %p154_p0 }
  0x25   : > { %p3912_p12 = por %p497_p8, %p160_p3  ;;  %s3737_s19 = smov [#allocation2]  }
  0x26   : > { %s4941_s24 = scalar_select %p3908_p11, 1, 0 }
  0x27   : > { %s4943_s25 = scalar_select %p3912_p12, 1, 0 }
  0x28   : > { %4942 = sst [smem:[#allocation24_spill]] %s4941_s24  ;;  %p3916_p13 = pnand %p2925_p9, %p504_p10 }
  0x29   : > { %4944 = sst [smem:[#allocation25_spill]] %s4943_s25  ;;  %s525_s20 = sshll.u32 %s3737_s19, 4  ;;  %s526_s20 = int_to_ptr.vmem [resolvable:$true] %s525_s20 }
  0x2a   : > { %s4945_s26 = scalar_select %p3916_p13, 1, 0 }
  0x2b   : > { %p3241_p2 = pneg %p3916_p13  ;;  %s4947_s3 = sld [smem:[#allocation29_spill]] }
  0x2d   : > { %p3925_p0 = pnand %p3241_p2, %p4899_p4 }
  0x2f   : > { %s4946_s21 = scalar_select %p3925_p0, 1, 0 }
  0x30   : > { %p4907_p10 = pneg %p3925_p0 }
  0x31   : > { %s3455_s27 = scalar_lea.hbm %s4947_s3, 1024 }
  0x32   : > { %p3456_p9 = scmp.ne.s32.totalorder %s4947_s3, %s3455_s27  ;;  %p3462_p3 = scmp.lt.u32.totalorder %s3455_s27, %s4947_s3 }
  0x34   : > { %p3458_p2 = pnand %p4907_p10, %p3456_p9 }
  0x36   : > { %p3459_p7 = pneg %p3458_p2 }
  0x38   : > { %p3464_p1 = pnand %p3462_p3, %p3459_p7 }
  0x3a   : > { %3467 = shalt.err (!%p3464_p1)
}
  0x3b   : > { %s3468_s22 = scalar_lea.vmem %s526_s20, 1024  ;;  %p3476_p11 = scmp.lt.s32.totalorder %s526_s20, %s526_s20 }
  0x3c   : > { %p3469_p4 = scmp.ne.s32.totalorder %s526_s20, %s3468_s22  ;;  %p3477_p6 = scmp.lt.s32.totalorder %s3468_s22, %s3468_s22 }
  0x3e   : > { %p3471_p8 = pnand %p3469_p4, %p4907_p10  ;;  %p3478_p13 = por %p3477_p6, %p3476_p11 }
  0x40   : > { %p3472_p12 = pneg %p3471_p8 }
  0x42   : > { %p3479_p5 = pnand %p3478_p13, %p3472_p12 }
  0x44   : > { %3482 = shalt.err (!%p3479_p5)
}
  0x45   : > { %s4903_s17 = smov 128   ;;  %s4905_s18 = smov 8  }
  0x46   : > { %3244 = dma.hbm_to_vmem [thread:$0]  (!%p3925_p0), %s4947_s3, 1024, %s526_s20, [#allocation3], %s4903_s17, %s4903_s17, %s4905_s18  }
  0x47   : > { %p4948_p4 = scmp.ne.s32.totalorder %s4939_s2, 0  ;;  %p4949_p6 = scmp.lt.s32.totalorder %s3735_s30, 2 }
  0x48   : > { %s3966_s24 = sand.u32 1, %s3731_s29   ;;  %s3216_s19 = smul.u32 3072, %s3735_s30 }
  0x49   : > { %p3961_p7 = pnand %p4949_p6, %p4948_p4  ;;  %s3215_s25 = smul.u32 192, %s3966_s24 }
  0x4a   : > { %s4951_s5 = sld [smem:[#allocation31_spill]]  ;;  %s4952_s1 = sand.u32 1, %s3735_s30  }
  0x4b   : > { %s4950_s22 = scalar_select %p3961_p7, 1, 0 }
  0x4c   : > { %s556_s2 = scalar_lea.vmem [#allocation7], %s3215_s25  ;;  %s3980_s17 = scalar_lea.sflag [#allocation3], %s4952_s1 }
  0x4d   : > { %s563_s20 = sshll.u32 %s556_s2, 4  ;;  %p3986_p11 = pneg %p3961_p7  ;;  %s3975_s20 = int_to_ptr.vmem [resolvable:$true] %s563_s20 }
  0x4f   : > { %s4953_s3 = scalar_select %p3986_p11, 1, 0 }
  0x50   : > { %s3973_s14 = scalar_lea.hbm %s4951_s5, %s3216_s19  ;;  %s3488_s25 = scalar_lea.hbm %s4951_s5, 6144 }
  0x51   : > { %s3483_s18 = scalar_lea.hbm %s3973_s14, 3072  ;;  %p3489_p1 = scmp.lt.u32.totalorder %s3973_s14, %s4951_s5 }
  0x52   : > { %p3484_p5 = scmp.ne.s32.totalorder %s3973_s14, %s3483_s18  ;;  %p3490_p3 = scmp.lt.u32.totalorder %s3488_s25, %s3483_s18 }
  0x53   : > { %p3492_p9 = scmp.lt.u32.totalorder %s3483_s18, %s3973_s14 }
  0x54   : > { %p3486_p12 = pnand %p3986_p11, %p3484_p5  ;;  %p3491_p8 = por %p3490_p3, %p3489_p1 }
  0x56   : > { %p3487_p13 = pneg %p3486_p12  ;;  %p3493_p2 = por %p3492_p9, %p3491_p8 }
  0x58   : > { %p3494_p4 = pnand %p3493_p2, %p3487_p13 }
  0x5a   : > { %3497 = shalt.err (!%p3494_p4)
}
  0x5b   : > { %s3498_s1 = scalar_lea.vmem %s3975_s20, 3072  ;;  %s3740_s15 = smov [#allocation7]  }
  0x5c   : > { %p3499_p6 = scmp.ne.s32.totalorder %s3975_s20, %s3498_s1  ;;  %s3503_s16 = sshll.u32 %s3740_s15, 4  ;;  %s3504_s16 = int_to_ptr.vmem [resolvable:$false] %s3503_s16 }
  0x5d   : > { %s3505_s19 = scalar_lea.vmem %s3504_s16, 6144  ;;  %p3506_p10 = scmp.lt.s32.totalorder %s3975_s20, %s3504_s16 }
  0x5e   : > { %p3501_p5 = pnand %p3499_p6, %p3986_p11  ;;  %p3507_p0 = scmp.lt.s32.totalorder %s3505_s19, %s3498_s1 }
  0x60   : > { %p3502_p12 = pneg %p3501_p5  ;;  %p3508_p1 = por %p3507_p0, %p3506_p10 }
  0x62   : > { %p3509_p3 = pnand %p3508_p1, %p3502_p12 }
  0x64   : > { %3512 = shalt.err (!%p3509_p3)
}
  0x65   : > { %s3741_s18 = smov 192   ;;  %s3742_s25 = smov 12  }
  0x66   : > { %3251 = dma.hbm_to_vmem [thread:$0]  (!%p3961_p7), %s3973_s14, 3072, %s3975_s20, %s3980_s17, %s3741_s18, %s3741_s18, %s3742_s25  }
  0x67   : > { %s3047_s2 = sshll.u32 %s3735_s30, 10  ;;  %s4954_s7 = sld [smem:[#allocation33_spill]] }
  0x68   : > { %s4955_s16 = sshll.u32 %s3966_s24, 6  ;;  %s4913_s29 = sshll.u32 %s3966_s24, 7 }
  0x69   : > { %s584_s19 = scalar_lea.vmem [#allocation8], %s4955_s16 }
  0x6a   : > { %s591_s5 = sshll.u32 %s584_s19, 4  ;;  %s4018_s5 = int_to_ptr.vmem [resolvable:$true] %s591_s5 }
  0x6d   : > { %s4014_s1 = scalar_lea.hbm %s4954_s7, %s3047_s2  ;;  %s3518_s27 = scalar_lea.hbm %s4954_s7, 2048 }
  0x6e   : > { %s3513_s12 = scalar_lea.hbm %s4014_s1, 1024  ;;  %p3519_p8 = scmp.lt.u32.totalorder %s4014_s1, %s4954_s7 }
  0x6f   : > { %p3514_p0 = scmp.ne.s32.totalorder %s4014_s1, %s3513_s12  ;;  %p3520_p9 = scmp.lt.u32.totalorder %s3518_s27, %s3513_s12 }
  0x70   : > { %p3522_p4 = scmp.lt.u32.totalorder %s3513_s12, %s4014_s1 }
  0x71   : > { %p3516_p10 = pnand %p3514_p0, %p3986_p11  ;;  %p3521_p2 = por %p3520_p9, %p3519_p8 }
  0x73   : > { %p3517_p13 = pneg %p3516_p10  ;;  %p3523_p6 = por %p3522_p4, %p3521_p2 }
  0x75   : > { %p3524_p5 = pnand %p3523_p6, %p3517_p13 }
  0x77   : > { %3527 = shalt.err (!%p3524_p5)
}
  0x78   : > { %s3528_s2 = scalar_lea.vmem %s4018_s5, 1024  ;;  %s3743_s15 = smov [#allocation8]  }
  0x79   : > { %p3529_p12 = scmp.ne.s32.totalorder %s4018_s5, %s3528_s2  ;;  %s3533_s16 = sshll.u32 %s3743_s15, 4  ;;  %s3534_s16 = int_to_ptr.vmem [resolvable:$false] %s3533_s16 }
  0x7a   : > { %s3535_s19 = scalar_lea.vmem %s3534_s16, 2048  ;;  %p3536_p0 = scmp.lt.s32.totalorder %s4018_s5, %s3534_s16 }
  0x7b   : > { %p3531_p1 = pnand %p3529_p12, %p3986_p11  ;;  %p3537_p10 = scmp.lt.s32.totalorder %s3535_s19, %s3528_s2 }
  0x7d   : > { %p3532_p3 = pneg %p3531_p1  ;;  %p3538_p8 = por %p3537_p10, %p3536_p0 }
  0x7f   : > { %p3539_p9 = pnand %p3538_p8, %p3532_p3 }
  0x81   : > { %3542 = shalt.err (!%p3539_p9)
}
  0x82   : > { %s4911_s12 = smov 64   ;;  %s4912_s14 = smov 4  }
  0x83   : > { %3254 = dma.hbm_to_vmem [thread:$0]  (!%p3961_p7), %s4014_s1, 1024, %s4018_s5, %s3980_s17, %s4911_s12, %s4911_s12, %s4912_s14  }
  0x84   : > { %s3048_s20 = sshll.u32 %s3735_s30, 11  ;;  %s4956_s11 = sld [smem:[#allocation34_spill]] }
  0x85   : > { %s623_s2 = scalar_lea.vmem [#allocation9], %s4913_s29 }
  0x86   : > { %s630_s15 = sshll.u32 %s623_s2, 4  ;;  %s4056_s15 = int_to_ptr.vmem [resolvable:$true] %s630_s15 }
  0x8a   : > { %s4052_s25 = scalar_lea.hbm %s4956_s11, %s3048_s20  ;;  %s3548_s19 = scalar_lea.hbm %s4956_s11, 4096 }
  0x8b   : > { %s3543_s16 = scalar_lea.hbm %s4052_s25, 2048  ;;  %p3549_p6 = scmp.lt.u32.totalorder %s4052_s25, %s4956_s11 }
  0x8c   : > { %p3544_p13 = scmp.ne.s32.totalorder %s4052_s25, %s3543_s16  ;;  %p3550_p5 = scmp.lt.u32.totalorder %s3548_s19, %s3543_s16 }
  0x8d   : > { %p3552_p1 = scmp.lt.u32.totalorder %s3543_s16, %s4052_s25 }
  0x8e   : > { %p3546_p2 = pnand %p3544_p13, %p3986_p11  ;;  %p3551_p12 = por %p3550_p5, %p3549_p6 }
  0x90   : > { %p3547_p4 = pneg %p3546_p2  ;;  %p3553_p3 = por %p3552_p1, %p3551_p12 }
  0x92   : > { %p3554_p0 = pnand %p3553_p3, %p3547_p4 }
  0x94   : > { %3557 = shalt.err (!%p3554_p0)
}
  0x95   : > { %s3558_s2 = scalar_lea.vmem %s4056_s15, 2048  ;;  %s3746_s5 = smov [#allocation9]  }
  0x96   : > { %p3559_p10 = scmp.ne.s32.totalorder %s4056_s15, %s3558_s2  ;;  %s3563_s1 = sshll.u32 %s3746_s5, 4  ;;  %s3564_s1 = int_to_ptr.vmem [resolvable:$false] %s3563_s1 }
  0x97   : > { %s3565_s27 = scalar_lea.vmem %s3564_s1, 4096  ;;  %p3566_p13 = scmp.lt.s32.totalorder %s4056_s15, %s3564_s1 }
  0x98   : > { %p3561_p8 = pnand %p3559_p10, %p3986_p11  ;;  %p3567_p2 = scmp.lt.s32.totalorder %s3565_s27, %s3558_s2 }
  0x9a   : > { %p3562_p9 = pneg %p3561_p8  ;;  %p3568_p6 = por %p3567_p2, %p3566_p13 }
  0x9c   : > { %p3569_p5 = pnand %p3568_p6, %p3562_p9 }
  0x9e   : > { %3572 = shalt.err (!%p3569_p5)
}
  0x9f   : > { %s4957_s16 = smov 8   ;;  %s4958_s19 = smov 128  }
  0xa0   : > { %3257 = dma.hbm_to_vmem [thread:$0]  (!%p3961_p7), %s4052_s25, 2048, %s4056_s15, %s3980_s17, %s4958_s19, %s4958_s19, %s4957_s16  }
  0xa1   : > { %s3747_s18 = smov [#allocation5]   ;;  %s4959_s13 = sld [smem:[#allocation36_spill]] }
  0xa2   : > { %s538_s5 = sshll.u32 %s3747_s18, 4  ;;  %s4960_s4 = sld [smem:[#allocation30_spill]]  ;;  %s539_s5 = int_to_ptr.vmem [resolvable:$true] %s538_s5 }
  0xa3   : > { %p4961_p12 = scmp.ne.s32.totalorder %s4946_s21, 0 }
  0xa5   : > { %p4962_p1 = pneg %p4961_p12 }
  0xa7   : > { %s4088_s27 = scalar_lea.hbm %s4959_s13, %s3048_s20 }
  0xa8   : > { %s3573_s29 = scalar_lea.hbm %s4960_s4, 1024 }
  0xa9   : > { %p3574_p4 = scmp.ne.s32.totalorder %s4960_s4, %s3573_s29  ;;  %p3580_p10 = scmp.lt.u32.totalorder %s3573_s29, %s4960_s4 }
  0xab   : > { %p3576_p3 = pnand %p3574_p4, %p4962_p1 }
  0xad   : > { %p3577_p0 = pneg %p3576_p3 }
  0xaf   : > { %p3582_p8 = pnand %p3580_p10, %p3577_p0 }
  0xb1   : > { %3585 = shalt.err (!%p3582_p8)
}
  0xb2   : > { %s3586_s20 = scalar_lea.vmem %s539_s5, 1024  ;;  %p4963_p13 = pmov %p4962_p1 }
  0xb3   : > { %p3587_p9 = scmp.ne.s32.totalorder %s539_s5, %s3586_s20  ;;  %p3594_p5 = scmp.lt.s32.totalorder %s539_s5, %s539_s5 }
  0xb4   : > { %p3595_p7 = scmp.lt.s32.totalorder %s3586_s20, %s3586_s20 }
  0xb5   : > { %p3589_p2 = pnand %p3587_p9, %p4963_p13 }
  0xb6   : > { %p3596_p11 = por %p3595_p7, %p3594_p5 }
  0xb7   : > { %p3590_p6 = pneg %p3589_p2 }
  0xb9   : > { %p3597_p1 = pnand %p3596_p11, %p3590_p6 }
  0xbb   : > { %3600 = shalt.err (!%p3597_p1)
}
  0xbc   : > { %3247 = dma.hbm_to_vmem [thread:$0]  (!%p4961_p12), %s4960_s4, 1024, %s539_s5, [#allocation6], %s4958_s19, %s4958_s19, %s4957_s16  }
  0xbd   : > { %s4964_s29 = sshll.u32 %s3966_s24, 7  ;;  %s3601_s18 = scalar_lea.hbm %s4088_s27, 2048 }
  0xbe   : > { %s651_s12 = scalar_lea.vmem [#allocation10], %s4964_s29  ;;  %p3602_p7 = scmp.ne.s32.totalorder %s4088_s27, %s3601_s18 }
  0xbf   : > { %s658_s14 = sshll.u32 %s651_s12, 4  ;;  %p4965_p11 = scmp.ne.s32.totalorder %s4953_s3, 0  ;;  %s4115_s14 = int_to_ptr.vmem [resolvable:$true] %s658_s14 }
  0xc0   : > { %s3606_s2 = scalar_lea.hbm %s4959_s13, 4096  ;;  %p3607_p0 = scmp.lt.u32.totalorder %s4088_s27, %s4959_s13 }
  0xc1   : > { %p3604_p4 = pnand %p3602_p7, %p4965_p11  ;;  %p3608_p10 = scmp.lt.u32.totalorder %s3606_s2, %s3601_s18 }
  0xc2   : > { %p3610_p8 = scmp.lt.u32.totalorder %s3601_s18, %s4088_s27 }
  0xc3   : > { %p3605_p3 = pneg %p3604_p4  ;;  %p3609_p12 = por %p3608_p10, %p3607_p0 }
  0xc5   : > { %p3611_p9 = por %p3610_p8, %p3609_p12 }
  0xc7   : > { %p3612_p13 = pnand %p3611_p9, %p3605_p3 }
  0xc9   : > { %3615 = shalt.err (!%p3612_p13)
}
  0xca   : > { %s3616_s24 = scalar_lea.vmem %s4115_s14, 2048  ;;  %s3748_s16 = smov [#allocation10]  }
  0xcb   : > { %p3617_p2 = scmp.ne.s32.totalorder %s4115_s14, %s3616_s24  ;;  %s3621_s19 = sshll.u32 %s3748_s16, 4  ;;  %s3622_s19 = int_to_ptr.vmem [resolvable:$false] %s3621_s19 }
  0xcc   : > { %s3623_s5 = scalar_lea.vmem %s3622_s19, 4096  ;;  %p3624_p1 = scmp.lt.s32.totalorder %s4115_s14, %s3622_s19 }
  0xcd   : > { %p3619_p6 = pnand %p3617_p2, %p4965_p11  ;;  %p3625_p7 = scmp.lt.s32.totalorder %s3623_s5, %s3616_s24 }
  0xcf   : > { %p3620_p5 = pneg %p3619_p6  ;;  %p3626_p4 = por %p3625_p7, %p3624_p1 }
  0xd1   : > { %p3627_p0 = pnand %p3626_p4, %p3620_p5 }
  0xd3   : > { %3630 = shalt.err (!%p3627_p0)
}
  0xd4   : > { %p4966_p3 = scmp.ne.s32.totalorder %s4950_s22, 0  ;;  %s4967_s20 = smov 4  }
  0xd5   : > { %s4968_s7 = smov 64   ;;  %p4969_p11 = scmp.ne.s32.totalorder %s4945_s26, 0 }
  0xd6   : > { %3260 = dma.hbm_to_vmem [thread:$0]  (!%p4966_p3), %s4088_s27, 2048, %s4115_s14, %s3980_s17, %s4968_s7, %s4968_s7, %s4967_s20  }
  0xd7   : > { %688 = sbr.rel (%p4969_p11) target bundleno = 3386 (0xd3a), region = 88  ;;  %p4970_p10 = scmp.eq.s32.totalorder (!%p4969_p11), %s3875_s0, 0 }
  0xde   : > { %3702 = dma.done.wait (%p4970_p10), [#allocation3], 1024   ;;  %p4971_p12 = pmov %p4970_p10 }
  0xdf   : > { %p4972_p8 = pmov %p4970_p10 }
  0xe0   : > { %3704 = vsyncadd (%p4971_p12), [#allocation3], 4294966272 }
  0xe1   : > { %3706 = dma.done.wait (%p4972_p8), [#allocation6], 1024   ;;  %p4973_p9 = pmov %p4972_p8 }
  0xe2   : > { %s698_s3 = sand.u32 1, %s3875_s0   ;;  %s4154_s17 = sand.u32 1, %s3727_s28  }
  0xe3   : > { %3708 = vsyncadd (%p4973_p9), [#allocation6], 4294966272  ;;  %s3217_s26 = smul.u32 192, %s4154_s17  ;;  %s699_s22 = scalar_lea.sflag [#allocation3], %s698_s3 }
  0xe4   : > { %p4974_p13 = scmp.ne.s32.totalorder %s4940_s23, 0 }
  0xe5   : > { %s4157_s27 = scalar_lea.vmem [#allocation7], %s3217_s26 }
  0xe6   : > { %3710 = dma.done.wait (%p4974_p13), %s699_s22, 8192  }
  0xe7   : > { %3712 = vsyncadd (%p4974_p13), %s699_s22, 4294959104  ;;  %s2942_s11 = sshll.u32 %s4154_s17, 6  ;;  %s2943_s29 = sshll.u32 %s4154_s17, 7 }
  0xe8   : > { %p823_p2 = scmp.lt.s32.totalorder %s3875_s0, 1  ;;  %s4975_s6 = sld [smem:[#allocation32_spill]] }
  0xe9   : > { %s4976_s22 = sld [smem:[#allocation35_spill]]  ;;  %s4977_s21 = sld [smem:[#allocation37_spill]] }
  0xea   : > { %s4167_s12 = scalar_select %p823_p2, %s3875_s0, 1 }
  0xeb   : > { %s4978_s13 = sld [smem:[#allocation38_spill]]  ;;  %s4979_s28 = sld [smem:[#allocation39_spill]] }
  0xec   : > { %s3218_s14 = smul.u32 3, %s4167_s12  ;;  %s2946_s7 = sshll.u32 %s4167_s12, 1 }
  0xed   : > { %s4207_s5 = scalar_lea.vmem [#allocation9], %s2943_s29  ;;  %p4980_p6 = scmp.ne.s32.totalorder %s3875_s0, 0 }
  0xee   : > { %s4185_s20 = scalar_lea.vmem %s4975_s6, %s3218_s14  ;;  %s4205_s14 = scalar_lea.vmem [#allocation8], %s2942_s11 }
  0xef   : > { %s4191_s4 = scalar_lea.vmem %s4976_s22, %s2946_s7  ;;  %s842_s1 = scalar_lea.vmem %s4977_s21, %s4167_s12 }
  0xf0   : > { %s4209_s6 = scalar_lea.vmem [#allocation10], %s2943_s29  ;;  %s4211_s7 = scalar_lea.vmem [#allocation12], %s2942_s11 }
  0xf1   : > { %s845_s15 = scalar_lea.vmem %s4978_s13, %s4167_s12  ;;  %s848_s19 = scalar_lea.vmem %s4979_s28, %s4167_s12 }
  0xf2   : > { %853 = sbr.rel (%p4980_p6) target bundleno = 250 (0xfa), region = 116  ;;  %s4981_s26 = sld [smem:[#allocation26_spill]] (!%p4980_p6) }
  0xf8   : > { %v854_v0 = vld [vmem:[%s4981_s26] sm:$0xff] (!%p4980_p6)  ;;  %v855_v1 = vld [vmem:[%s4981_s26 + $0x8] sm:$0xff] (!%p4980_p6) }
  0xf9   : > { %856 = vst [vmem:[#allocation11] sm:$0xff] %v854_v0  ;;  %857 = vst [vmem:[#allocation11 + $0x8] sm:$0xff] %v855_v1 }
  0xfa PF: > { %v3322_v2 = vld [vmem:[%s4157_s27 + $0x4] ss:$12 sps:$4 sm:$0xff]   ;;  %v3324_v3 = vld [vmem:[%s4157_s27] ss:$12 sps:$4 sm:$0xff]   ;;  %v3749_v4 = vmov 0   ;;  %v3750_v5 = vmov 0.0   ;;  %v895_v32 = vlaneseq  ;;  %s4987_s18 = scalar_lea.vmem %s4879_s10, %s4167_s12 }
  0xfb   : > { %1070 = vmatprep.mubr.bf16.mxu0 %v3749_v4  ;;  %3117 = vmatprep.subr.bf16.mxu1 %v3750_v5  ;;  %v3325_v6 = vld [vmem:[%s4157_s27 + $0x1c] ss:$12 sps:$4 sm:$0xff]   ;;  %v3327_v7 = vld [vmem:[%s4157_s27 + $0x18] ss:$12 sps:$4 sm:$0xff]   ;;  %v3328_v8 = vld [vmem:[%s4157_s27 + $0x34] ss:$12 sps:$4 sm:$0xff]  }
  0xfc   : > { %1038 = vmatprep.subr.bf16.mxu0 %v3322_v2  ;;  %v3330_v9 = vld [vmem:[%s4157_s27 + $0x30] ss:$12 sps:$4 sm:$0xff]   ;;  %v3331_v10 = vld [vmem:[%s4157_s27 + $0x4c] ss:$12 sps:$4 sm:$0xff]   ;;  %v3333_v11 = vld [vmem:[%s4157_s27 + $0x48] ss:$12 sps:$4 sm:$0xff]  }
  0xfd   : > { %1039 = vmatpush1.bf16.msra.mxu0 %v3324_v3  ;;  %v3334_v12 = vld [vmem:[%s4157_s27 + $0x64] ss:$12 sps:$4 sm:$0xff]   ;;  %v3346_v13 = vld [vmem:[%s4157_s27 + $0x8] ss:$12 sps:$4 sm:$0xff]   ;;  %v3347_v14 = vld [vmem:[%s4157_s27 + $0x20] ss:$12 sps:$4 sm:$0xff]  }
  0xfe   : > { %1040 = vmatprep.subr.bf16.mxu0 %v3325_v6  ;;  %3118 = vmatpush3.bf16.msra.mxu1 %v3346_v13  ;;  %v3336_v15 = vld [vmem:[%s4157_s27 + $0x60] ss:$12 sps:$4 sm:$0xff]   ;;  %v3337_v16 = vld [vmem:[%s4157_s27 + $0x7c] ss:$12 sps:$4 sm:$0xff]   ;;  %v3339_v17 = vld [vmem:[%s4157_s27 + $0x78] ss:$12 sps:$4 sm:$0xff]  }
  0xff   : > { %3119 = vmatprep.subr.bf16.mxu1 %v3750_v5  ;;  %v3348_v18 = vld [vmem:[%s4157_s27 + $0x38] ss:$12 sps:$4 sm:$0xff]   ;;  %v3340_v19 = vld [vmem:[%s4157_s27 + $0x94] ss:$12 sps:$4 sm:$0xff]   ;;  %v3349_v20 = vld [vmem:[%s4157_s27 + $0x50] ss:$12 sps:$4 sm:$0xff]  }
 0x100   : > { %v3342_v21 = vld [vmem:[%s4157_s27 + $0x90] ss:$12 sps:$4 sm:$0xff]   ;;  %v3343_v22 = vld [vmem:[%s4157_s27 + $0xac] ss:$12 sps:$4 sm:$0xff]   ;;  %v3350_v23 = vld [vmem:[%s4157_s27 + $0x68] ss:$12 sps:$4 sm:$0xff]  }
 0x101   : > { %1041 = vmatpush1.bf16.msra.mxu0 %v3327_v7  ;;  %v3345_v24 = vld [vmem:[%s4157_s27 + $0xa8] ss:$12 sps:$4 sm:$0xff]   ;;  %v858_v25 = vld [vmem:[#allocation11] sm:$0xff]  ;;  %v3353_v30 = vld [vmem:[%s4157_s27 + $0xb0] ss:$12 sps:$4 sm:$0xff]   ;;  %vm3751_vm0 = vmmov 0  }
 0x102   : > { %1042 = vmatprep.subr.bf16.mxu0 %v3328_v8  ;;  %3120 = vmatpush3.bf16.msra.mxu1 %v3347_v14  ;;  %v859_v26 = vld [vmem:[#allocation11 + $0x8] sm:$0xff]  ;;  %v3352_v29 = vld [vmem:[%s4157_s27 + $0x98] ss:$12 sps:$4 sm:$0xff]   ;;  %s4982_s29 = sld [smem:[#allocation27_spill]]  ;;  %vm1153_vm1 = vcmask 130048   ;;  %v4261_v33 = vshrl.u32 %v895_v32, 7 }
 0x103   : > { %3121 = vmatprep.subr.bf16.mxu1 %v3750_v5  ;;  %v3351_v27 = vld [vmem:[%s4157_s27 + $0x80] ss:$12 sps:$4 sm:$0xff]   ;;  %v860_v28 = vpack.c.bf16 %v859_v26, %v858_v25  ;;  %3133 = vmatprep.mubr.msk.bf16.mxu1 %vm3751_vm0, %v3750_v5  ;;  %s3752_s24 = smov 96   ;;  %s3753_s21 = smov 64   ;;  %vm1656_vm2 = vcmask 261120   ;;  %vm1770_vm3 = vcmask 523264  }
 0x104   : > { %v897_v34 = vsub.s32 0, %v4261_v33  ;;  %v893_v35 = vld [vmem:[%s4185_s20] sm:$0x7]  ;;  %v901_v36 = vsub.s32 1, %v4261_v33  ;;  %v905_v52 = vsub.s32 2, %v4261_v33  ;;  %v4300_v3 = vld [vmem:[#allocation2 + $0x8] sm:$0xff]  ;;  %s4985_s27 = scalar_lea.vmem %s4877_s8, %s4167_s12  ;;  %s4986_s20 = scalar_lea.vmem %s4878_s9, %s4167_s12 }
 0x105   : > { %1043 = vmatpush1.bf16.msra.mxu0 %v3330_v9  ;;  %v4290_v61 = vld [vmem:[#allocation2] sm:$0xff]  ;;  %s3754_s3 = smov 32   ;;  %vm2048_vm4 = vcmask 785408   ;;  %s4984_s28 = sld [smem:[#allocation28_spill]] }
 0x106   : > { %1044 = vmatprep.subr.bf16.mxu0 %v3331_v10  ;;  %3122 = vmatpush3.bf16.msra.mxu1 %v3348_v18  ;;  %v898_v37 = vrot.slane %v893_v35, %v897_v34  ;;  %v902_v39 = vrot.slane %v893_v35, %v901_v36  ;;  %v906_v53 = vrot.slane %v893_v35, %v905_v52  ;;  %v1310_v35 = vld [vmem:[#allocation2 + $0x30] sm:$0xff]  ;;  %v3021_v33 = vld [vmem:[%s842_s1] ss:$0 sm:$0xff]  ;;  %s3050_s1 = sshll.u32 %s3875_s0, 10  ;;  %s4990_s13 = sld [smem:[#allocation41_spill]] }
 0x107   : > { %3123 = vmatprep.subr.bf16.mxu1 %v3750_v5  ;;  %s2655_s11 = scalar_lea.sflag [#allocation13], %s4154_s17 }
 0x108   : > { %s4983_s16 = smov %s4982_s29  ;;  %v3354_v31 = vld [vmem:[%s4982_s29] sm:$0xff]  }
 0x109   : > { %1045 = vmatpush1.bf16.msra.mxu0 %v3333_v11  ;;  %v3355_v49 = vld [vmem:[%s4983_s16 + $0x8] sm:$0xff]   ;;  %v3356_v50 = vld [vmem:[%s4983_s16 + $0x10] sm:$0xff]   ;;  %v3357_v51 = vld [vmem:[%s4983_s16 + $0x18] sm:$0xff]  }
 0x10a   : > { %1046 = vmatprep.subr.bf16.mxu0 %v3334_v12  ;;  %3124 = vmatpush3.bf16.msra.mxu1 %v3349_v20 }
 0x10b   : > { %3125 = vmatprep.subr.bf16.mxu1 %v3750_v5 }
 0x10c   : > { %s4784_s25 = scalar_lea.hbm %s4990_s13, %s3050_s1 }
 0x10d   : > { %1047 = vmatpush1.bf16.msra.mxu0 %v3336_v15 }
 0x10e   : > { %1048 = vmatprep.subr.bf16.mxu0 %v3337_v16  ;;  %3126 = vmatpush3.bf16.msra.mxu1 %v3350_v23 }
 0x10f   : > { %3127 = vmatprep.subr.bf16.mxu1 %v3750_v5 }
 0x111   : > { %1049 = vmatpush1.bf16.msra.mxu0 %v3339_v17  ;;  %v4326_v17 = vld [vmem:[#allocation2 + $0x10] sm:$0xff] }
 0x112   : > { %1050 = vmatprep.subr.bf16.mxu0 %v3340_v19  ;;  %3128 = vmatpush3.bf16.msra.mxu1 %v3351_v27  ;;  %v4333_v19 = vld [vmem:[#allocation2 + $0x18] sm:$0xff]  ;;  %v1308_v27 = vld [vmem:[#allocation2 + $0x20] sm:$0xff] }
 0x113   : > { %3129 = vmatprep.subr.bf16.mxu1 %v3750_v5 }
 0x115   : > { %1051 = vmatpush1.bf16.msra.mxu0 %v3342_v21 }
 0x116   : > { %1052 = vmatprep.subr.bf16.mxu0 %v3343_v22  ;;  %3130 = vmatpush3.bf16.msra.mxu1 %v3352_v29  ;;  %v4370_v29 = vld [vmem:[#allocation2 + $0x28] sm:$0xff] }
 0x117   : > { %3131 = vmatprep.subr.bf16.mxu1 %v3750_v5 }
 0x119   : > { %1053 = vmatpush1.bf16.msra.mxu0 %v3345_v24 }
 0x11a   : > { %3132 = vmatpush3.bf16.msra.mxu1 %v3353_v30 }
 0x11c   : > { %1071 = vmatmul.mubr.bf16.vlgmr.msra.gmra.mrb[0].mxu0 %v860_v28 }
 0x11d   : > { %1198 = vmatprep.mubr.bf16.mxu0 %v3749_v4  ;;  %3134 = vmatmul.mubr.bf16.vlgmr.msra.gmra.mrb[0].mxu1 %v860_v28 }
 0x11e   : > { %3139 = vmatprep.mubr.msk.bf16.mxu1 %vm1153_vm1, %v3354_v31 }
 0x1ef   : > { %v1072_v38 = vpop.f32.mrb[0].mxu0 }
 0x1f0   : > { %v1074_v40 = vpop.f32.mrb[1].mxu0  ;;  %v1073_v42 = vadd.f32 %v1072_v38, %v898_v37  ;;  %v1115_v54 = vpop.f32.mrb[0].mxu1  ;;  %v4398_v38 = vld [vmem:[#allocation2 + $0x38] sm:$0xff] }
 0x1f1   : > { %v1076_v41 = vpop.f32.mrb[2].mxu0  ;;  %v1075_v45 = vadd.f32 %v1074_v40, %v902_v39  ;;  %v1116_v55 = vadd.f32 %v1115_v54, %v906_v53  ;;  %v3135_v56 = vpop.f32.mrb[1].mxu1 }
 0x1f2   : > { %v1077_v43 = vadd.f32 %v1076_v41, %v898_v37  ;;  %v1078_v44 = vpop.f32.mrb[3].mxu0  ;;  %v1118_v57 = vpop.f32.mrb[2].mxu1 }
 0x1f3   : > { %v1079_v46 = vadd.f32 %v1078_v44, %v902_v39  ;;  %v1119_v58 = vadd.f32 %v1118_v57, %v906_v53  ;;  %v3136_v59 = vpop.f32.mrb[3].mxu1 }
 0x1f4   : > { %v1122_v47 = vpack.c.bf16 %v1077_v43, %v1073_v42 }
 0x1f5   : > { %v1123_v48 = vpack.c.bf16 %v1079_v46, %v1075_v45  ;;  %v1124_v60 = vpack.c.bf16 %v1119_v58, %v1116_v55 }
 0x1f7   : > { %1166 = vmatprep.subr.bf16.mxu0 %v1123_v48  ;;  %3137 = vmatprep.subr.bf16.mxu1 %v1124_v60 }
 0x1f8   : > { %1167 = vmatpush1.bf16.msra.mxu0 %v1122_v47  ;;  %3138 = vmatpush3.bf16.msra.mxu1 %v1124_v60 }
 0x1fb   : > { %2976 = vmatmul.mubr.msk.bf16.vlgmr.msra.gmra.mrb[4].mxu0 %vm1153_vm1, %v3354_v31  ;;  %3140 = vmatmul.mubr.msk.bf16.vlgmr.msra.gmra.mrb[4].mxu1 %vm1153_vm1, %v3355_v49 }
 0x1fc   : > { %1208 = vmatprep.mubr.bf16.mxu0 %v3749_v4  ;;  %3143 = vmatprep.mubr.msk.bf16.mxu1 %vm1153_vm1, %v3356_v50 }
 0x203   : > { %2977 = vmatmul.mubr.msk.bf16.gmra.mrb[8].mxu0 %vm1153_vm1, %v3355_v49  ;;  %3144 = vmatmul.mubr.msk.bf16.gmra.mrb[8].mxu1 %vm1153_vm1, %v3357_v51 }
 0x204   : > { %1218 = vmatprep.mubr.bf16.mxu0 %v3749_v4 }
 0x20b   : > { %2978 = vmatmul.mubr.msk.bf16.gmra.mrb[12].mxu0 %vm1153_vm1, %v3356_v50 }
 0x20c   : > { %1228 = vmatprep.mubr.bf16.mxu0 %v3749_v4 }
 0x213   : > { %2979 = vmatmul.mubr.msk.bf16.gmra.mrb[16].mxu0 %vm1153_vm1, %v3357_v51 }
 0x2ce   : > { %v1200_v62 = vpop.f32.mrb[4].mxu0  ;;  %v3141_v42 = vpop.f32.mrb[4].mxu1 }
 0x2cf   : > { %v4293_v63 = vmul.f32 %v4290_v61, %v1200_v62  ;;  %v1202_v0 = vpop.f32.mrb[5].mxu0  ;;  %v1273_v43 = vpop.f32.mrb[5].mxu1  ;;  %v4462_v53 = vmul.f32 %v3141_v42, %v4326_v17 }
 0x2d0   : > { %v4296_v1 = vmul.f32 %v4290_v61, %v1202_v0  ;;  %v1204_v2 = vpop.f32.mrb[6].mxu0  ;;  %v3142_v44 = vpop.f32.mrb[6].mxu1  ;;  %v4443_v47 = vmul.f32 %v4290_v61, %v1273_v43 }
 0x2d1   : > { %1328 = vrot.lane.b32.xlu0 %v4293_v63, %s3752_s24  ;;  %v1206_v6 = vpop.f32.mrb[7].mxu0  ;;  %v4305_v7 = vmul.f32 %v4300_v3, %v1204_v2  ;;  %v1276_v45 = vpop.f32.mrb[7].mxu1  ;;  %v4451_v52 = vmul.f32 %v3142_v44, %v4333_v19 }
 0x2d2   : > { %1472 = vrot.lane.b32.xlu1 %v4296_v1, %s3753_s21  ;;  %v4320_v14 = vmul.f32 %v4300_v3, %v1206_v6  ;;  %v4446_v49 = vmul.f32 %v4300_v3, %v1276_v45 }
 0x2d5   : > { %1360 = vrot.lane.b32.xlu0 %v4293_v63, %s3753_s21 }
 0x2d6   : > { %1330 = vrot.lane.b32.xlu1 %v4305_v7, %s3752_s24  ;;  %v1210_v8 = vpop.f32.mrb[8].mxu0  ;;  %v3145_v46 = vpop.f32.mrb[8].mxu1 }
 0x2d7   : > { %v1212_v9 = vpop.f32.mrb[9].mxu0  ;;  %v4331_v18 = vmul.f32 %v4326_v17, %v1210_v8  ;;  %v1289_v48 = vpop.f32.mrb[9].mxu1  ;;  %v4478_v57 = vmul.f32 %v3145_v46, %v1310_v35 }
 0x2d8   : > { %v1214_v10 = vpop.f32.mrb[10].mxu0  ;;  %v4353_v25 = vmul.f32 %v4326_v17, %v1212_v9  ;;  %v4448_v50 = vpop.f32.mrb[10].mxu1  ;;  %v4464_v54 = vmul.f32 %v1308_v27, %v1289_v48 }
 0x2d9   : > { %1392 = vrot.lane.b32.xlu0 %v4293_v63, %s3754_s3  ;;  %v1216_v11 = vpop.f32.mrb[11].mxu0  ;;  %v4338_v22 = vmul.f32 %v4333_v19, %v1214_v10  ;;  %v1292_v51 = vpop.f32.mrb[11].mxu1 }
 0x2da   : > { %1362 = vrot.lane.b32.xlu1 %v4305_v7, %s3753_s21  ;;  %v4356_v26 = vmul.f32 %v4333_v19, %v1216_v11  ;;  %v4489_v60 = vmul.f32 %v4370_v29, %v1292_v51 }
 0x2dd   : > { %1440 = vrot.lane.b32.xlu0 %v4296_v1, %s3752_s24 }
 0x2de   : > { %1394 = vrot.lane.b32.xlu1 %v4305_v7, %s3754_s3  ;;  %v1220_v12 = vpop.f32.mrb[12].mxu0 }
 0x2df   : > { %v1222_v13 = vpop.f32.mrb[13].mxu0  ;;  %v4368_v28 = vmul.f32 %v1308_v27, %v1220_v12 }
 0x2e0   : > { %v1224_v15 = vpop.f32.mrb[14].mxu0  ;;  %v4381_v31 = vmul.f32 %v1308_v27, %v1222_v13 }
 0x2e1   : > { %1504 = vrot.lane.b32.xlu0 %v4296_v1, %s3754_s3  ;;  %v1226_v16 = vpop.f32.mrb[15].mxu0  ;;  %v4375_v30 = vmul.f32 %v4370_v29, %v1224_v15 }
 0x2e2   : > { %1474 = vrot.lane.b32.xlu1 %v4320_v14, %s3753_s21  ;;  %v4384_v32 = vmul.f32 %v4370_v29, %v1226_v16 }
 0x2e5   : > { %1442 = vrot.lane.b32.xlu0 %v4320_v14, %s3752_s24 }
 0x2e6   : > { %1506 = vrot.lane.b32.xlu1 %v4320_v14, %s3754_s3  ;;  %v1230_v20 = vpop.f32.mrb[16].mxu0 }
 0x2e7   : > { %v1232_v21 = vpop.f32.mrb[17].mxu0  ;;  %v4396_v37 = vmul.f32 %v1310_v35, %v1230_v20 }
 0x2e8   : > { %v1234_v23 = vpop.f32.mrb[18].mxu0  ;;  %v4409_v40 = vmul.f32 %v1310_v35, %v1232_v21 }
 0x2e9   : > { %1332 = vrot.lane.b32.xlu0 %v4331_v18, %s3752_s24  ;;  %v1236_v24 = vpop.f32.mrb[19].mxu0  ;;  %v4403_v39 = vmul.f32 %v4398_v38, %v1234_v23 }
 0x2ea   : > { %1334 = vrot.lane.b32.xlu1 %v4338_v22, %s3752_s24  ;;  %v4412_v41 = vmul.f32 %v4398_v38, %v1236_v24 }
 0x2ed   : > { %1364 = vrot.lane.b32.xlu0 %v4331_v18, %s3753_s21 }
 0x2ee   : > { %1366 = vrot.lane.b32.xlu1 %v4338_v22, %s3753_s21 }
 0x2f1   : > { %1396 = vrot.lane.b32.xlu0 %v4331_v18, %s3754_s3 }
 0x2f2   : > { %1398 = vrot.lane.b32.xlu1 %v4338_v22, %s3754_s3 }
 0x2f5   : > { %1444 = vrot.lane.b32.xlu0 %v4353_v25, %s3752_s24 }
 0x2f6   : > { %1446 = vrot.lane.b32.xlu1 %v4356_v26, %s3752_s24 }
 0x2f9   : > { %1476 = vrot.lane.b32.xlu0 %v4353_v25, %s3753_s21 }
 0x2fa   : > { %1478 = vrot.lane.b32.xlu1 %v4356_v26, %s3753_s21 }
 0x2fd   : > { %1508 = vrot.lane.b32.xlu0 %v4353_v25, %s3754_s3 }
 0x2fe   : > { %1510 = vrot.lane.b32.xlu1 %v4356_v26, %s3754_s3 }
 0x301   : > { %1336 = vrot.lane.b32.xlu0 %v4368_v28, %s3752_s24 }
 0x302   : > { %1338 = vrot.lane.b32.xlu1 %v4375_v30, %s3752_s24 }
 0x305   : > { %1448 = vrot.lane.b32.xlu0 %v4381_v31, %s3752_s24 }
 0x306   : > { %1450 = vrot.lane.b32.xlu1 %v4384_v32, %s3752_s24 }
 0x309   : > { %1480 = vrot.lane.b32.xlu0 %v4381_v31, %s3753_s21 }
 0x30a   : > { %1482 = vrot.lane.b32.xlu1 %v4384_v32, %s3753_s21 }
 0x30d   : > { %1512 = vrot.lane.b32.xlu0 %v4381_v31, %s3754_s3 }
 0x30e   : > { %1514 = vrot.lane.b32.xlu1 %v4384_v32, %s3754_s3 }
 0x311   : > { %1340 = vrot.lane.b32.xlu0 %v4396_v37, %s3752_s24 }
 0x312   : > { %1342 = vrot.lane.b32.xlu1 %v4403_v39, %s3752_s24 }
 0x315   : > { %1452 = vrot.lane.b32.xlu0 %v4409_v40, %s3752_s24 }
 0x316   : > { %1454 = vrot.lane.b32.xlu1 %v4412_v41, %s3752_s24 }
 0x319   : > { %1484 = vrot.lane.b32.xlu0 %v4409_v40, %s3753_s21 }
 0x31a   : > { %1486 = vrot.lane.b32.xlu1 %v4412_v41, %s3753_s21 }
 0x31d   : > { %1516 = vrot.lane.b32.xlu0 %v4409_v40, %s3754_s3 }
 0x31e   : > { %1518 = vrot.lane.b32.xlu1 %v4412_v41, %s3754_s3 }
 0x321   : > { %1368 = vrot.lane.b32.xlu0 %v4368_v28, %s3753_s21 }
 0x322   : > { %1370 = vrot.lane.b32.xlu1 %v4375_v30, %s3753_s21 }
 0x325   : > { %1372 = vrot.lane.b32.xlu0 %v4396_v37, %s3753_s21 }
 0x326   : > { %1374 = vrot.lane.b32.xlu1 %v4403_v39, %s3753_s21 }
 0x329   : > { %1400 = vrot.lane.b32.xlu0 %v4368_v28, %s3754_s3 }
 0x32a   : > { %1402 = vrot.lane.b32.xlu1 %v4375_v30, %s3754_s3 }
 0x32d   : > { %1404 = vrot.lane.b32.xlu0 %v4396_v37, %s3754_s3 }
 0x32e   : > { %1406 = vrot.lane.b32.xlu1 %v4403_v39, %s3754_s3 }
 0x331   : > { %1554 = vrot.lane.b32.xlu0 %v4446_v49, %s3752_s24 }
 0x332   : > { %1552 = vrot.lane.b32.xlu1 %v4443_v47, %s3752_s24 }
 0x335   : > { %1558 = vrot.lane.b32.xlu0 %v4451_v52, %s3752_s24 }
 0x336   : > { %1584 = vrot.lane.b32.xlu1 %v4443_v47, %s3753_s21 }
 0x339   : > { %1588 = vrot.lane.b32.xlu0 %v4462_v53, %s3753_s21 }
 0x33a   : > { %1586 = vrot.lane.b32.xlu1 %v4446_v49, %s3753_s21 }
 0x33d   : > { %1560 = vrot.lane.b32.xlu0 %v4464_v54, %s3752_s24 }
 0x33e   : > { %1556 = vrot.lane.b32.xlu1 %v4462_v53, %s3752_s24 }
 0x341   : > { %1620 = vrot.lane.b32.xlu0 %v4462_v53, %s3754_s3 }
 0x342   : > { %1616 = vrot.lane.b32.xlu1 %v4443_v47, %s3754_s3 }
 0x343   : > { %v1329_v55 = vpop.permute.xlu0 %1328 }
 0x344   : > { %v1473_v56 = vpop.permute.xlu1 %1472  ;;  %v1352_v0 = vadd.f32 %v1329_v55, %v4293_v63 }
 0x345   : > { %1592 = vrot.lane.b32.xlu0 %v4464_v54, %s3753_s21 }
 0x346   : > { %1618 = vrot.lane.b32.xlu1 %v4446_v49, %s3754_s3 }
 0x347   : > { %v1361_v58 = vpop.permute.xlu0 %1360 }
 0x348   : > { %v1331_v59 = vpop.permute.xlu1 %1330  ;;  %v1384_v3 = vadd.f32 %v1361_v58, %v1352_v0 }
 0x349   : > { %1564 = vrot.lane.b32.xlu0 %v4478_v57, %s3752_s24  ;;  %v1353_v2 = vadd.f32 %v1331_v59, %v4305_v7 }
 0x34a   : > { %1590 = vrot.lane.b32.xlu1 %v4451_v52, %s3753_s21 }
 0x34b   : > { %v1393_v61 = vpop.permute.xlu0 %1392 }
 0x34c   : > { %v1363_v62 = vpop.permute.xlu1 %1362  ;;  %v1416_v10 = vadd.f32 %v1393_v61, %v1384_v3 }
 0x34d   : > { %v1385_v6 = vadd.f32 %v1363_v62, %v1353_v2 }
 0x34e   : > { %1562 = vrot.lane.b32.xlu1 %v4489_v60, %s3752_s24 }
 0x34f   : > { %v1441_v8 = vpop.permute.xlu0 %1440 }
 0x350   : > { %v1395_v9 = vpop.permute.xlu1 %1394  ;;  %v1464_v15 = vadd.f32 %v1441_v8, %v4296_v1 }
 0x351   : > { %v1417_v11 = vadd.f32 %v1395_v9, %v1385_v6 }
 0x352   : > { %1622 = vrot.lane.b32.xlu1 %v4451_v52, %s3754_s3  ;;  %v1496_v16 = vadd.f32 %v1473_v56, %v1464_v15 }
 0x353   : > { %v1648_v12 = vpack.c.bf16 %v1417_v11, %v1416_v10  ;;  %v1505_v13 = vpop.permute.xlu0 %1504 }
 0x354   : > { %v1475_v63 = vpop.permute.xlu1 %1474  ;;  %v1528_v27 = vadd.f32 %v1505_v13, %v1496_v16 }
 0x355   : > { %3155 = vmatprep.mubr.msk.bf16.mxu0 %vm1656_vm2, %v1648_v12 }
 0x356   : > { %1594 = vrot.lane.b32.xlu1 %v4489_v60, %s3753_s21 }
 0x357   : > { %v1443_v7 = vpop.permute.xlu0 %1442 }
 0x358   : > { %v1465_v20 = vadd.f32 %v1443_v7, %v4320_v14  ;;  %v1507_v21 = vpop.permute.xlu1 %1506 }
 0x35a   : > { %v1497_v23 = vadd.f32 %v1475_v63, %v1465_v20 }
 0x35b   : > { %v1333_v24 = vpop.permute.xlu0 %1332 }
 0x35c   : > { %v1529_v29 = vadd.f32 %v1507_v21, %v1497_v23  ;;  %v1335_v35 = vpop.permute.xlu1 %1334 }
 0x35e   : > { %v1652_v42 = vpack.c.bf16 %v1529_v29, %v1528_v27 }
 0x35f   : > { %v1365_v43 = vpop.permute.xlu0 %1364 }
 0x360   : > { %3211 = vmatprep.subr.msk.bf16.mxu0 %vm1656_vm2, %v1652_v42  ;;  %v1367_v1 = vpop.permute.xlu1 %1366  ;;  %v1670_v44 = vsel %vm1656_vm2, %v1652_v42, 0 }
 0x361   : > { %3148 = vmatpush3.bf16.xpose.msra.mxu0 %v1670_v44 }
 0x363   : > { %v1397_v45 = vpop.permute.xlu0 %1396 }
 0x364   : > { %v1399_v46 = vpop.permute.xlu1 %1398 }
 0x367   : > { %v1445_v48 = vpop.permute.xlu0 %1444 }
 0x368   : > { %v1447_v51 = vpop.permute.xlu1 %1446  ;;  %v1466_v14 = vadd.f32 %v1445_v48, %v4353_v25 }
 0x369   : > { %v1467_v58 = vadd.f32 %v1447_v51, %v4356_v26 }
 0x36b   : > { %v1477_v55 = vpop.permute.xlu0 %1476 }
 0x36c   : > { %v1479_v56 = vpop.permute.xlu1 %1478  ;;  %v1498_v59 = vadd.f32 %v1477_v55, %v1466_v14 }
 0x36d   : > { %v1499_v61 = vadd.f32 %v1479_v56, %v1467_v58 }
 0x36f   : > { %v1509_v62 = vpop.permute.xlu0 %1508 }
 0x370   : > { %v1530_v0 = vadd.f32 %v1509_v62, %v1498_v59  ;;  %v1511_v2 = vpop.permute.xlu1 %1510 }
 0x371   : > { %v1531_v3 = vadd.f32 %v1511_v2, %v1499_v61  ;;  %v1354_v2 = vadd.f32 %v1333_v24, %v4331_v18 }
 0x373   : > { %v1653_v6 = vpack.c.bf16 %v1531_v3, %v1530_v0  ;;  %v1337_v8 = vpop.permute.xlu0 %1336  ;;  %v1355_v3 = vadd.f32 %v1335_v35, %v4338_v22 }
 0x374   : > { %v1339_v9 = vpop.permute.xlu1 %1338 }
 0x375   : > { %3212 = vmatprep.subr.msk.bf16.mxu0 %vm1656_vm2, %v1653_v6  ;;  %v1673_v10 = vsel %vm1656_vm2, %v1653_v6, 0  ;;  %v1357_v22 = vadd.f32 %v1339_v9, %v4375_v30 }
 0x376   : > { %3150 = vmatpush3.bf16.xpose.msra.mxu0 %v1673_v10 }
 0x377   : > { %v1449_v11 = vpop.permute.xlu0 %1448 }
 0x378   : > { %v1451_v12 = vpop.permute.xlu1 %1450  ;;  %v1468_v13 = vadd.f32 %v1449_v11, %v4381_v31 }
 0x379   : > { %v1469_v15 = vadd.f32 %v1451_v12, %v4384_v32  ;;  %v1386_v12 = vadd.f32 %v1365_v43, %v1354_v2 }
 0x37b   : > { %v1481_v25 = vpop.permute.xlu0 %1480 }
 0x37c   : > { %v1483_v26 = vpop.permute.xlu1 %1482  ;;  %v1500_v63 = vadd.f32 %v1481_v25, %v1468_v13  ;;  %v1387_v25 = vadd.f32 %v1367_v1, %v1355_v3 }
 0x37d   : > { %v1501_v7 = vadd.f32 %v1483_v26, %v1469_v15  ;;  %v1356_v15 = vadd.f32 %v1337_v8, %v4368_v28 }
 0x37e   : > { %v1419_v13 = vadd.f32 %v1399_v46, %v1387_v25 }
 0x37f   : > { %v1513_v16 = vpop.permute.xlu0 %1512 }
 0x380   : > { %v1532_v20 = vadd.f32 %v1513_v16, %v1500_v63  ;;  %v1515_v21 = vpop.permute.xlu1 %1514 }
 0x381   : > { %v1533_v23 = vadd.f32 %v1515_v21, %v1501_v7 }
 0x383   : > { %v1654_v27 = vpack.c.bf16 %v1533_v23, %v1532_v20  ;;  %v1341_v29 = vpop.permute.xlu0 %1340 }
 0x384   : > { %v1343_v42 = vpop.permute.xlu1 %1342  ;;  %v1358_v1 = vadd.f32 %v1341_v29, %v4396_v37 }
 0x385   : > { %3213 = vmatprep.subr.msk.bf16.mxu0 %vm1656_vm2, %v1654_v27  ;;  %v1676_v44 = vsel %vm1656_vm2, %v1654_v27, 0  ;;  %v1359_v20 = vadd.f32 %v1343_v42, %v4403_v39 }
 0x386   : > { %3152 = vmatpush3.bf16.xpose.msra.mxu0 %v1676_v44 }
 0x387   : > { %v1453_v48 = vpop.permute.xlu0 %1452 }
 0x388   : > { %v1455_v51 = vpop.permute.xlu1 %1454  ;;  %v1470_v55 = vadd.f32 %v1453_v48, %v4409_v40 }
 0x389   : > { %v1471_v14 = vadd.f32 %v1455_v51, %v4412_v41  ;;  %v1418_v41 = vadd.f32 %v1397_v45, %v1386_v12 }
 0x38b   : > { %v1485_v31 = vpop.permute.xlu0 %1484  ;;  %v1649_v35 = vpack.c.bf16 %v1419_v13, %v1418_v41 }
 0x38c   : > { %v1487_v32 = vpop.permute.xlu1 %1486  ;;  %v1502_v56 = vadd.f32 %v1485_v31, %v1470_v55 }
 0x38d   : > { %v1503_v58 = vadd.f32 %v1487_v32, %v1471_v14 }
 0x38f   : > { %v1517_v59 = vpop.permute.xlu0 %1516 }
 0x390   : > { %v1534_v61 = vadd.f32 %v1517_v59, %v1502_v56  ;;  %v1519_v62 = vpop.permute.xlu1 %1518 }
 0x391   : > { %v1535_v0 = vadd.f32 %v1519_v62, %v1503_v58 }
 0x393   : > { %v1655_v6 = vpack.c.bf16 %v1535_v0, %v1534_v61  ;;  %v1369_v10 = vpop.permute.xlu0 %1368 }
 0x394   : > { %v1371_v11 = vpop.permute.xlu1 %1370  ;;  %v1388_v24 = vadd.f32 %v1369_v10, %v1356_v15 }
 0x395   : > { %3214 = vmatprep.subr.msk.bf16.mxu0 %vm1656_vm2, %v1655_v6  ;;  %v1679_v40 = vsel %vm1656_vm2, %v1655_v6, 0  ;;  %v1389_v63 = vadd.f32 %v1371_v11, %v1357_v22 }
 0x396   : > { %3154 = vmatpush3.bf16.xpose.msra.mxu0 %v1679_v40 }
 0x397   : > { %v1373_v26 = vpop.permute.xlu0 %1372  ;;  %3191 = vmatprep.subr.bf16.mxu0 %v3750_v5 }
 0x398   : > { %v1375_v18 = vpop.permute.xlu1 %1374  ;;  %v1390_v46 = vadd.f32 %v1373_v26, %v1358_v1  ;;  %v1756_v26 = vld [vmem:[#allocation5 + $0x10] sm:$0xff] }
 0x399   : > { %v1391_v21 = vadd.f32 %v1375_v18, %v1359_v20  ;;  %v1757_v20 = vld [vmem:[#allocation5 + $0x18] sm:$0xff] }
 0x39b   : > { %v1401_v43 = vpop.permute.xlu0 %1400 }
 0x39c   : > { %v1420_v7 = vadd.f32 %v1401_v43, %v1388_v24  ;;  %v1403_v16 = vpop.permute.xlu1 %1402 }
 0x39d   : > { %v1421_v45 = vadd.f32 %v1403_v16, %v1389_v63  ;;  %3156 = vmatmul.mubr.msk.bf16.vlgmr.msra.gmra.mrb[20].mxu0 %vm1656_vm2, %v1649_v35  ;;  %v1755_v63 = vld [vmem:[#allocation5 + $0x8] sm:$0xff] }
 0x39f   : > { %v1650_v23 = vpack.c.bf16 %v1421_v45, %v1420_v7  ;;  %v1405_v28 = vpop.permute.xlu0 %1404 }
 0x3a0   : > { %v1422_v8 = vadd.f32 %v1405_v28, %v1390_v46  ;;  %v1407_v27 = vpop.permute.xlu1 %1406  ;;  %v1760_v28 = vld [vmem:[#allocation5 + $0x30] sm:$0xff] }
 0x3a1   : > { %v1423_v30 = vadd.f32 %v1407_v27, %v1391_v21  ;;  %3159 = vmatprep.mubr.msk.bf16.mxu0 %vm1656_vm2, %v1650_v23 }
 0x3a3   : > { %v1651_v9 = vpack.c.bf16 %v1423_v30, %v1422_v8  ;;  %v1555_v39 = vpop.permute.xlu0 %1554 }
 0x3a4   : > { %v1553_v44 = vpop.permute.xlu1 %1552  ;;  %v1577_v31 = vadd.f32 %v1555_v39, %v4446_v49  ;;  %v1761_v39 = vld [vmem:[#allocation5 + $0x38] sm:$0xff] }
 0x3a5   : > { %3160 = vmatmul.mubr.msk.bf16.gmra.mrb[24].mxu0 %vm1656_vm2, %v1651_v9  ;;  %v1576_v48 = vadd.f32 %v1553_v44, %v4443_v47 }
 0x3a6   : > { %3207 = vmatprep.mubr.msk.bf16.mxu0 %vm3751_vm0, %v3750_v5 }
 0x3a7   : > { %v1559_v42 = vpop.permute.xlu0 %1558 }
 0x3a8   : > { %v1585_v37 = vpop.permute.xlu1 %1584  ;;  %v1579_v6 = vadd.f32 %v1559_v42, %v4451_v52  ;;  %v1754_v52 = vld [vmem:[#allocation5] sm:$0xff] }
 0x3a9   : > { %v1608_v55 = vadd.f32 %v1585_v37, %v1576_v48  ;;  %v1758_v37 = vld [vmem:[#allocation5 + $0x20] sm:$0xff] }
 0x3ab   : > { %v1589_v14 = vpop.permute.xlu0 %1588 }
 0x3ac   : > { %v1587_v29 = vpop.permute.xlu1 %1586 }
 0x3ad   : > { %v1609_v56 = vadd.f32 %v1587_v29, %v1577_v31 }
 0x3af   : > { %v4530_v62 = vpop.permute.xlu0 %1560 }
 0x3b0   : > { %v1557_v51 = vpop.permute.xlu1 %1556 }
 0x3b1   : > { %v1578_v0 = vadd.f32 %v1557_v51, %v4462_v53 }
 0x3b3   : > { %v1610_v47 = vadd.f32 %v1589_v14, %v1578_v0  ;;  %v1621_v49 = vpop.permute.xlu0 %1620 }
 0x3b4   : > { %v1617_v32 = vpop.permute.xlu1 %1616 }
 0x3b5   : > { %v1640_v58 = vadd.f32 %v1617_v32, %v1608_v55  ;;  %v1642_v12 = vadd.f32 %v1621_v49, %v1610_v47 }
 0x3b8   : > { %v1619_v59 = vpop.permute.xlu1 %1618 }
 0x3b9   : > { %v1641_v61 = vadd.f32 %v1619_v59, %v1609_v56  ;;  %v1759_v56 = vld [vmem:[#allocation5 + $0x28] sm:$0xff] }
 0x3bb   : > { %v1871_v2 = vpack.c.bf16 %v1641_v61, %v1640_v58 }
 0x3bc   : > { %v1591_v3 = vpop.permute.xlu1 %1590 }
 0x3bd   : > { %3163 = vmatprep.subr.bf16.mxu1 %v1871_v2  ;;  %v1611_v11 = vadd.f32 %v1591_v3, %v1579_v6  ;;  %v1593_v3 = vpop.permute.xlu0 %1592 }
 0x3be   : > { %3164 = vmatpush3.bf16.msra.mxu1 %v1871_v2  ;;  %v4549_v2 = vmul.f32 %v4448_v50, %v4398_v38 }
 0x3c0   : > { %v4534_v10 = vpop.permute.xlu1 %1562 }
 0x3c1   : > { %v4561_v6 = vpop.permute.xlu0 %1564 }
 0x3c4   : > { %v1623_v25 = vpop.permute.xlu1 %1622 }
 0x3c5   : > { %v1643_v40 = vadd.f32 %v1623_v25, %v1611_v11 }
 0x3c7   : > { %v1872_v41 = vpack.c.bf16 %v1643_v40, %v1642_v12 }
 0x3c8   : > { %v1595_v38 = vpop.permute.xlu1 %1594 }
 0x3c9   : > { %3165 = vmatprep.subr.bf16.mxu1 %v1872_v41 }
 0x3ca   : > { %3166 = vmatpush3.bf16.msra.mxu1 %v1872_v41 }
 0x470   : > { %v3157_v13 = vpop.f32.mrb[20].mxu0 }
 0x471   : > { %v1748_v53 = vmul.f32 0.17677669, %v3157_v13  ;;  %v1715_v15 = vpop.f32.mrb[21].mxu0 }
 0x472   : > { %v1746_v18 = vmul.f32 0.17677669, %v1715_v15  ;;  %v3158_v22 = vpop.f32.mrb[22].mxu0 }
 0x473   : > { %v1718_v24 = vpop.f32.mrb[23].mxu0  ;;  %v1764_v35 = vadd.f32 %v1756_v26, %v1748_v53  ;;  %v1749_v43 = vmul.f32 0.17677669, %v3158_v22 }
 0x474   : > { %v1747_v1 = vmul.f32 0.17677669, %v1718_v24  ;;  %v1762_v16 = vadd.f32 %v1754_v52, %v1746_v18 }
 0x475   : > { %v1777_v7 = vsel %vm1770_vm3, %v1764_v35, -inf  ;;  %v1765_v23 = vadd.f32 %v1757_v20, %v1749_v43 }
 0x476   : > { %1778 = vmax.xlane.f32.xlu0 %v1777_v7  ;;  %v1763_v45 = vadd.f32 %v1755_v63, %v1747_v1  ;;  %v1771_v30 = vsel %vm1770_vm3, %v1762_v16, -inf  ;;  %v1581_v63 = vadd.f32 %v4534_v10, %v4489_v60 }
 0x477   : > { %v1780_v51 = vsel %vm1770_vm3, %v1765_v23, -inf }
 0x478   : > { %v3161_v46 = vpop.f32.mrb[24].mxu0  ;;  %v1774_v21 = vsel %vm1770_vm3, %v1763_v45, -inf }
 0x479   : > { %v1752_v8 = vmul.f32 0.17677669, %v3161_v46  ;;  %1775 = vmax.xlane.f32.xlu1 %v1774_v21  ;;  %v1731_v27 = vpop.f32.mrb[25].mxu0 }
 0x47a   : > { %v1750_v9 = vmul.f32 0.17677669, %v1731_v27  ;;  %1772 = vmax.xlane.f32.xlu0 %v1771_v30  ;;  %v3162_v44 = vpop.f32.mrb[26].mxu0 }
 0x47b   : > { %v1753_v29 = vmul.f32 0.17677669, %v3162_v44  ;;  %v1734_v42 = vpop.f32.mrb[27].mxu0  ;;  %v1768_v48 = vadd.f32 %v1760_v28, %v1752_v8 }
 0x47c   : > { %v1751_v31 = vmul.f32 0.17677669, %v1734_v42  ;;  %v1766_v32 = vadd.f32 %v1758_v37, %v1750_v9 }
 0x47d   : > { %v1789_v55 = vsel %vm1770_vm3, %v1768_v48, -inf  ;;  %v4541_v14 = vadd.f32 %v1761_v39, %v1753_v29 }
 0x47e   : > { %1781 = vmax.xlane.f32.xlu0 %v1780_v51  ;;  %1790 = vmax.xlane.f32.xlu1 %v1789_v55  ;;  %v1783_v58 = vsel %vm1770_vm3, %v1766_v32, -inf  ;;  %v1767_v61 = vadd.f32 %v1759_v56, %v1751_v31 }
 0x47f   : > { %v1792_v59 = vsel %vm1770_vm3, %v4541_v14, -inf }
 0x480   : > { %v1786_v0 = vsel %vm1770_vm3, %v1767_v61, -inf }
 0x482   : > { %1784 = vmax.xlane.f32.xlu1 %v1783_v58  ;;  %1793 = vmax.xlane.f32.xlu0 %v1792_v59 }
 0x486   : > { %1787 = vmax.xlane.f32.xlu0 %v1786_v0 }
 0x493   : > { %1566 = vrot.lane.b32.xlu1 %v4549_v2, %s3752_s24 }
 0x497   : > { %1626 = vrot.lane.b32.xlu1 %v4489_v60, %s3754_s3 }
 0x49b   : > { %1598 = vrot.lane.b32.xlu1 %v4549_v2, %s3753_s21 }
 0x49c   : > { %1624 = vrot.lane.b32.xlu0 %v4464_v54, %s3754_s3 }
 0x4a0   : > { %1596 = vrot.lane.b32.xlu0 %v4478_v57, %s3753_s21 }
 0x503   : > { %v1779_v50 = vpop.xlane.xlu0 %1778 }
 0x504   : > { %v1797_v47 = vsub.f32 %v1764_v35, %v1779_v50  ;;  %v1580_v35 = vadd.f32 %v4530_v62, %v4464_v54 }
 0x506   : > { %v1807_v49 = vmul.f32 1.442695, %v1797_v47  ;;  %v1776_v11 = vpop.xlane.xlu1 %1775  ;;  %v1612_v21 = vadd.f32 %v1593_v3, %v1580_v35 }
 0x507   : > { %v1773_v12 = vpop.xlane.xlu0 %1772  ;;  %v1796_v40 = vsub.f32 %v1763_v45, %v1776_v11 }
 0x508   : > { %3407 = vpow2.f32 %v1807_v49  ;;  %v1795_v25 = vsub.f32 %v1762_v16, %v1773_v12 }
 0x509   : > { %v1805_v15 = vmul.f32 1.442695, %v1796_v40 }
 0x50a   : > { %v1803_v41 = vmul.f32 1.442695, %v1795_v25 }
 0x50b   : > { %v1782_v13 = vpop.xlane.xlu0 %1781  ;;  %v1791_v26 = vpop.xlane.xlu1 %1790 }
 0x50c   : > { %3409 = vpow2.f32 %v1803_v41  ;;  %v1798_v53 = vsub.f32 %v1765_v23, %v1782_v13  ;;  %v1801_v22 = vsub.f32 %v1768_v48, %v1791_v26  ;;  %v1613_v23 = vadd.f32 %v1595_v38, %v1581_v63 }
 0x50e   : > { %v1809_v18 = vmul.f32 1.442695, %v1798_v53  ;;  %v1815_v1 = vmul.f32 1.442695, %v1801_v22 }
 0x50f   : > { %v1794_v52 = vpop.xlane.xlu0 %1793  ;;  %v1785_v24 = vpop.xlane.xlu1 %1784 }
 0x510   : > { %3411 = vpow2.f32 %v1809_v18  ;;  %v1799_v7 = vsub.f32 %v1766_v32, %v1785_v24  ;;  %v1802_v54 = vsub.f32 %v4541_v14, %v1794_v52  ;;  %v1582_v52 = vadd.f32 %v4561_v6, %v4478_v57 }
 0x511   : > { %3413 = vpow2.f32 %v1805_v15 }
 0x512   : > { %v3408_v43 = vpop.eup %3407  ;;  %3415 = vpow2.f32 %v1815_v1  ;;  %v1811_v62 = vmul.f32 1.442695, %v1799_v7  ;;  %v1817_v37 = vmul.f32 1.442695, %v1802_v54 }
 0x513   : > { %v1788_v16 = vpop.xlane.xlu0 %1787  ;;  %v4567_v20 = vpop.permute.xlu1 %1566  ;;  %v1825_v45 = vsel %vm1770_vm3, %v3408_v43, 0.0 }
 0x514   : > { %v1800_v46 = vsub.f32 %v1767_v61, %v1788_v16  ;;  %1826 = vadd.xlane.f32.xlu1 %v1825_v45  ;;  %v1583_v24 = vadd.f32 %v4567_v20, %v4549_v2 }
 0x516   : > { %v3410_v28 = vpop.eup %3409  ;;  %v1813_v8 = vmul.f32 1.442695, %v1800_v46 }
 0x517   : > { %v1625_v60 = vpop.permute.xlu0 %1624  ;;  %v1627_v10 = vpop.permute.xlu1 %1626  ;;  %v1819_v27 = vsel %vm1770_vm3, %v3410_v28, 0.0 }
 0x518   : > { %3417 = vpow2.f32 %v1813_v8  ;;  %v1644_v30 = vadd.f32 %v1625_v60, %v1612_v21  ;;  %v1645_v9 = vadd.f32 %v1627_v10, %v1613_v23  ;;  %1820 = vadd.xlane.f32.xlu1 %v1819_v27 }
 0x519   : > { %3419 = vpow2.f32 %v1811_v62 }
 0x51a   : > { %v3412_v44 = vpop.eup %3411  ;;  %v1873_v39 = vpack.c.bf16 %v1645_v9, %v1644_v30  ;;  %3421 = vpow2.f32 %v1817_v37 }
 0x51b   : > { %v1828_v29 = vsel %vm1770_vm3, %v3412_v44, 0.0  ;;  %v3414_v42 = vpop.eup %3413  ;;  %v1599_v61 = vpop.permute.xlu1 %1598 }
 0x51c   : > { %1829 = vadd.xlane.f32.xlu0 %v1828_v29  ;;  %3167 = vmatprep.subr.bf16.mxu1 %v1873_v39  ;;  %v1822_v48 = vsel %vm1770_vm3, %v3414_v42, 0.0  ;;  %v3416_v51 = vpop.eup %3415  ;;  %v1597_v3 = vpop.permute.xlu0 %1596  ;;  %v1615_v7 = vadd.f32 %v1599_v61, %v1583_v24 }
 0x51d   : > { %3168 = vmatpush3.bf16.msra.mxu1 %v1873_v39  ;;  %v1837_v32 = vsel %vm1770_vm3, %v3416_v51, 0.0  ;;  %v1614_v1 = vadd.f32 %v1597_v3, %v1582_v52 }
 0x520   : > { %1823 = vadd.xlane.f32.xlu0 %v1822_v48  ;;  %v3360_v48 = vld [vmem:[%s4205_s14 + $0x8] sm:$0xff]  }
 0x522   : > { %v3418_v31 = vpop.eup %3417 }
 0x523   : > { %v1834_v55 = vsel %vm1770_vm3, %v3418_v31, 0.0  ;;  %v3420_v14 = vpop.eup %3419 }
 0x524   : > { %1835 = vadd.xlane.f32.xlu1 %v1834_v55  ;;  %1838 = vadd.xlane.f32.xlu0 %v1837_v32  ;;  %v1831_v56 = vsel %vm1770_vm3, %v3420_v14, 0.0  ;;  %v3422_v58 = vpop.eup %3421  ;;  %v3363_v55 = vld [vmem:[%s4205_s14 + $0x20] sm:$0xff]   ;;  %v3364_v32 = vld [vmem:[%s4205_s14 + $0x28] sm:$0xff]  }
 0x525   : > { %v1840_v59 = vsel %vm1770_vm3, %v3422_v58, 0.0 }
 0x528   : > { %1832 = vadd.xlane.f32.xlu0 %v1831_v56 }
 0x52c   : > { %1841 = vadd.xlane.f32.xlu0 %v1840_v59 }
 0x535   : > { %1630 = vrot.lane.b32.xlu1 %v4549_v2, %s3754_s3 }
 0x542   : > { %1628 = vrot.lane.b32.xlu0 %v4478_v57, %s3754_s3 }
 0x5a1   : > { %v1827_v0 = vpop.xlane.xlu1 %1826 }
 0x5a2   : > { %3423 = vrcp.f32 %v1827_v0 }
 0x5a5   : > { %v1821_v38 = vpop.xlane.xlu1 %1820 }
 0x5a6   : > { %3425 = vrcp.f32 %v1821_v38 }
 0x5a9   : > { %v1830_v50 = vpop.xlane.xlu0 %1829 }
 0x5aa   : > { %3427 = vrcp.f32 %v1830_v50 }
 0x5ac   : > { %v3424_v47 = vpop.eup %3423 }
 0x5ad   : > { %v1853_v49 = vmul.f32 %v3424_v47, %v3408_v43  ;;  %v1824_v11 = vpop.xlane.xlu0 %1823 }
 0x5ae   : > { %3429 = vrcp.f32 %v1824_v11 }
 0x5af   : > { %1861 = vst.msk [vmem:[%s4211_s7 + $0x10] sm:$0xff] %vm1770_vm3, %v1853_v49 }
 0x5b0   : > { %v3426_v12 = vpop.eup %3425 }
 0x5b1   : > { %v1839_v25 = vpop.xlane.xlu0 %1838  ;;  %v1836_v40 = vpop.xlane.xlu1 %1835  ;;  %v1851_v41 = vmul.f32 %v3426_v12, %v3410_v28 }
 0x5b2   : > { %3431 = vrcp.f32 %v1839_v25 }
 0x5b3   : > { %3433 = vrcp.f32 %v1836_v40  ;;  %1859 = vst.msk [vmem:[%s4211_s7] sm:$0xff] %vm1770_vm3, %v1851_v41 }
 0x5b4   : > { %v3428_v13 = vpop.eup %3427 }
 0x5b5   : > { %v1854_v26 = vmul.f32 %v3428_v13, %v3412_v44  ;;  %v1833_v53 = vpop.xlane.xlu0 %1832  ;;  %v1631_v35 = vpop.permute.xlu1 %1630 }
 0x5b6   : > { %3435 = vrcp.f32 %v1833_v53  ;;  %v1647_v57 = vadd.f32 %v1631_v35, %v1615_v7  ;;  %v3448_v7 = vld [vmem:[#allocation2 + $0x8] sm:$0xff] }
 0x5b7   : > { %1862 = vst.msk [vmem:[%s4211_s7 + $0x18] sm:$0xff] %vm1770_vm3, %v1854_v26  ;;  %v1868_v54 = vpack.c.bf16 %v1854_v26, %v1853_v49 }
 0x5b8   : > { %v3430_v15 = vpop.eup %3429 }
 0x5b9   : > { %v1842_v18 = vpop.xlane.xlu0 %1841  ;;  %v1852_v22 = vmul.f32 %v3430_v15, %v3414_v42  ;;  %v3359_v42 = vld [vmem:[%s4205_s14] sm:$0xff]  }
 0x5ba   : > { %3437 = vrcp.f32 %v1842_v18  ;;  %3192 = vmatpush3.bf16.msra.mxu0 %v3359_v42 }
 0x5bb   : > { %1860 = vst.msk [vmem:[%s4211_s7 + $0x8] sm:$0xff] %vm1770_vm3, %v1852_v22  ;;  %v1867_v63 = vpack.c.bf16 %v1852_v22, %v1851_v41  ;;  %3193 = vmatprep.subr.bf16.mxu0 %v3750_v5 }
 0x5bc   : > { %v3432_v43 = vpop.eup %3431 }
 0x5bd   : > { %v3434_v16 = vpop.eup %3433  ;;  %v1629_v45 = vpop.permute.xlu0 %1628  ;;  %3171 = vmatprep.mubr.msk.bf16.mxu1 %vm1770_vm3, %v1867_v63  ;;  %v1857_v46 = vmul.f32 %v3432_v43, %v3416_v51  ;;  %v3361_v51 = vld [vmem:[%s4205_s14 + $0x10] sm:$0xff]   ;;  %v3447_v43 = vld [vmem:[#allocation2] sm:$0xff] }
 0x5be   : > { %v1646_v6 = vadd.f32 %v1629_v45, %v1614_v1  ;;  %v1856_v21 = vmul.f32 %v3434_v16, %v3418_v31  ;;  %3194 = vmatpush3.bf16.msra.mxu0 %v3360_v48  ;;  %v3362_v31 = vld [vmem:[%s4205_s14 + $0x18] sm:$0xff]  }
 0x5bf   : > { %1865 = vst.msk [vmem:[%s4211_s7 + $0x30] sm:$0xff] %vm1770_vm3, %v1857_v46  ;;  %3195 = vmatprep.subr.bf16.mxu0 %v3750_v5 }
 0x5c0   : > { %v3436_v2 = vpop.eup %3435  ;;  %v1874_v20 = vpack.c.bf16 %v1647_v57, %v1646_v6  ;;  %1864 = vst.msk [vmem:[%s4211_s7 + $0x28] sm:$0xff] %vm1770_vm3, %v1856_v21 }
 0x5c1   : > { %v1855_v23 = vmul.f32 %v3436_v2, %v3420_v14  ;;  %v3365_v14 = vld [vmem:[%s4205_s14 + $0x30] sm:$0xff]  }
 0x5c2   : > { %3169 = vmatprep.subr.bf16.mxu1 %v1874_v20  ;;  %3196 = vmatpush3.bf16.msra.mxu0 %v3361_v51  ;;  %v3449_v51 = vld [vmem:[#allocation2 + $0x20] sm:$0xff] }
 0x5c3   : > { %3170 = vmatpush3.bf16.msra.mxu1 %v1874_v20  ;;  %1863 = vst.msk [vmem:[%s4211_s7 + $0x20] sm:$0xff] %vm1770_vm3, %v1855_v23  ;;  %v1869_v62 = vpack.c.bf16 %v1856_v21, %v1855_v23  ;;  %3197 = vmatprep.subr.bf16.mxu0 %v3750_v5 }
 0x5c4   : > { %v3438_v28 = vpop.eup %3437  ;;  %3179 = vmatprep.subr.bf16.mxu1 %v3750_v5 }
 0x5c5   : > { %v1858_v8 = vmul.f32 %v3438_v28, %v3422_v58 }
 0x5c6   : > { %3172 = vmatmul.mubr.msk.bf16.vlgmr.msra.gmra.mrb[12].mxu1 %vm1770_vm3, %v1868_v54  ;;  %3198 = vmatpush3.bf16.msra.mxu0 %v3362_v31  ;;  %v3450_v31 = vld [vmem:[#allocation2 + $0x28] sm:$0xff] }
 0x5c7   : > { %3175 = vmatprep.mubr.msk.bf16.mxu1 %vm1770_vm3, %v1869_v62  ;;  %1866 = vst.msk [vmem:[%s4211_s7 + $0x38] sm:$0xff] %vm1770_vm3, %v1858_v8  ;;  %v1870_v60 = vpack.c.bf16 %v1858_v8, %v1857_v46  ;;  %3199 = vmatprep.subr.bf16.mxu0 %v3750_v5 }
 0x5ca   : > { %3200 = vmatpush3.bf16.msra.mxu0 %v3363_v55 }
 0x5cb   : > { %3201 = vmatprep.subr.bf16.mxu0 %v3750_v5 }
 0x5ce   : > { %3176 = vmatmul.mubr.msk.bf16.gmra.mrb[16].mxu1 %vm1770_vm3, %v1870_v60  ;;  %3202 = vmatpush3.bf16.msra.mxu0 %v3364_v32 }
 0x5cf   : > { %3187 = vmatprep.mubr.msk.bf16.mxu1 %vm3751_vm0, %v3750_v5  ;;  %3203 = vmatprep.subr.bf16.mxu0 %v3750_v5 }
 0x5d2   : > { %3204 = vmatpush3.bf16.msra.mxu0 %v3365_v14 }
 0x5d3   : > { %3205 = vmatprep.subr.bf16.mxu0 %v3750_v5 }
 0x699   : > { %v3173_v10 = vpop.f32.mrb[12].mxu1 }
 0x69a   : > { %1964 = vrot.lane.b32.xlu0 %v3173_v10, %s3754_s3  ;;  %v4610_v27 = vpop.f32.mrb[13].mxu1 }
 0x69b   : > { %v3174_v30 = vpop.f32.mrb[14].mxu1 }
 0x69c   : > { %1966 = vrot.lane.b32.xlu1 %v3174_v30, %s3754_s3  ;;  %v4613_v9 = vpop.f32.mrb[15].mxu1 }
 0x69e   : > { %1988 = vrot.lane.b32.xlu0 %v3173_v10, %s3753_s21 }
 0x6a0   : > { %1990 = vrot.lane.b32.xlu1 %v3174_v30, %s3753_s21 }
 0x6a1   : > { %v4617_v44 = vpop.f32.mrb[16].mxu1 }
 0x6a2   : > { %2012 = vrot.lane.b32.xlu0 %v3173_v10, %s3752_s24  ;;  %v4620_v37 = vpop.f32.mrb[17].mxu1 }
 0x6a3   : > { %v4622_v39 = vpop.f32.mrb[18].mxu1 }
 0x6a4   : > { %2014 = vrot.lane.b32.xlu1 %v3174_v30, %s3752_s24  ;;  %v4625_v29 = vpop.f32.mrb[19].mxu1 }
 0x6a6   : > { %1960 = vrot.lane.b32.xlu0 %v4610_v27, %s3754_s3 }
 0x6a8   : > { %1962 = vrot.lane.b32.xlu1 %v4613_v9, %s3754_s3 }
 0x6aa   : > { %1984 = vrot.lane.b32.xlu0 %v4610_v27, %s3753_s21 }
 0x6ac   : > { %1986 = vrot.lane.b32.xlu1 %v4613_v9, %s3753_s21 }
 0x6ae   : > { %2008 = vrot.lane.b32.xlu0 %v4610_v27, %s3752_s24 }
 0x6b0   : > { %2010 = vrot.lane.b32.xlu1 %v4613_v9, %s3752_s24 }
 0x6b2   : > { %1972 = vrot.lane.b32.xlu0 %v4617_v44, %s3754_s3 }
 0x6b4   : > { %1974 = vrot.lane.b32.xlu1 %v4622_v39, %s3754_s3 }
 0x6b6   : > { %1996 = vrot.lane.b32.xlu0 %v4617_v44, %s3753_s21 }
 0x6b8   : > { %1998 = vrot.lane.b32.xlu1 %v4622_v39, %s3753_s21 }
 0x6ba   : > { %1968 = vrot.lane.b32.xlu0 %v4620_v37, %s3754_s3 }
 0x6bc   : > { %1970 = vrot.lane.b32.xlu1 %v4625_v29, %s3754_s3 }
 0x6be   : > { %1992 = vrot.lane.b32.xlu0 %v4620_v37, %s3753_s21 }
 0x6c0   : > { %1994 = vrot.lane.b32.xlu1 %v4625_v29, %s3753_s21 }
 0x6c2   : > { %2016 = vrot.lane.b32.xlu0 %v4620_v37, %s3752_s24 }
 0x6c4   : > { %2018 = vrot.lane.b32.xlu1 %v4625_v29, %s3752_s24 }
 0x6c6   : > { %2020 = vrot.lane.b32.xlu0 %v4617_v44, %s3752_s24 }
 0x6c8   : > { %2022 = vrot.lane.b32.xlu1 %v4622_v39, %s3752_s24  ;;  %s4989_s24 = sld [smem:[#allocation24_spill]] }
 0x6ce   : > { %p4991_p1 = scmp.ne.s32.totalorder %s4989_s24, 0 }
 0x70c   : > { %v1965_v56 = vpop.permute.xlu0 %1964 }
 0x70d   : > { %v2034_v0 = vsel %vm1656_vm2, %v3173_v10, %v1965_v56 }
 0x70e   : > { %v1967_v58 = vpop.permute.xlu1 %1966 }
 0x70f   : > { %v2035_v50 = vsel %vm1656_vm2, %v3174_v30, %v1967_v58 }
 0x710   : > { %v1989_v59 = vpop.permute.xlu0 %1988 }
 0x711   : > { %v2042_v3 = vsel %vm1770_vm3, %v2034_v0, %v1989_v59 }
 0x712   : > { %v1991_v61 = vpop.permute.xlu1 %1990 }
 0x713   : > { %v2043_v49 = vsel %vm1770_vm3, %v2035_v50, %v1991_v61  ;;  %v3451_v61 = vld [vmem:[#allocation2 + $0x30] sm:$0xff] }
 0x714   : > { %v2013_v38 = vpop.permute.xlu0 %2012 }
 0x715   : > { %v2051_v47 = vsel %vm2048_vm4, %v2042_v3, %v2013_v38  ;;  %v3452_v3 = vld [vmem:[#allocation2 + $0x38] sm:$0xff] }
 0x716   : > { %v2015_v11 = vpop.permute.xlu1 %2014  ;;  %v2059_v25 = vmul.f32 %v2051_v47, %v4326_v17  ;;  %v3366_v47 = vld [vmem:[%s4205_s14 + $0x38] sm:$0xff]  }
 0x717   : > { %v2052_v12 = vsel %vm2048_vm4, %v2043_v49, %v2015_v11  ;;  %3206 = vmatpush3.bf16.msra.mxu0 %v3366_v47 }
 0x718   : > { %v2060_v40 = vmul.f32 %v2052_v12, %v4333_v19  ;;  %v1961_v41 = vpop.permute.xlu0 %1960 }
 0x719   : > { %v2032_v18 = vsel %vm1656_vm2, %v4610_v27, %v1961_v41 }
 0x71a   : > { %v2068_v13 = vpack.c.bf16 %v2060_v40, %v2059_v25  ;;  %v1963_v26 = vpop.permute.xlu1 %1962 }
 0x71b   : > { %v2033_v24 = vsel %vm1656_vm2, %v4613_v9, %v1963_v26 }
 0x71c   : > { %v1985_v53 = vpop.permute.xlu0 %1984 }
 0x71d   : > { %v2040_v22 = vsel %vm1770_vm3, %v2032_v18, %v1985_v53  ;;  %v3453_v53 = vld [vmem:[#allocation11] sm:$0xff] }
 0x71e   : > { %v1987_v15 = vpop.permute.xlu1 %1986 }
 0x71f   : > { %v2041_v17 = vsel %vm1770_vm3, %v2033_v24, %v1987_v15 }
 0x720   : > { %v2009_v52 = vpop.permute.xlu0 %2008 }
 0x721   : > { %v2049_v35 = vsel %vm2048_vm4, %v2040_v22, %v2009_v52  ;;  %v3454_v52 = vld [vmem:[#allocation11 + $0x8] sm:$0xff] }
 0x722   : > { %v2011_v63 = vpop.permute.xlu1 %2010  ;;  %v2057_v1 = vmul.f32 %v3447_v43, %v2049_v35  ;;  %v3367_v35 = vld [vmem:[%s4207_s5] ss:$8 sps:$4 sm:$0xff]  }
 0x723   : > { %v2050_v19 = vsel %vm2048_vm4, %v2041_v17, %v2011_v63  ;;  %v3369_v17 = vld [vmem:[%s4207_s5 + $0x4] ss:$8 sps:$4 sm:$0xff]   ;;  %v3372_v63 = vld [vmem:[%s4207_s5 + $0x14] ss:$8 sps:$4 sm:$0xff]  }
 0x724   : > { %v2058_v16 = vmul.f32 %v3448_v7, %v2050_v19  ;;  %v1973_v45 = vpop.permute.xlu0 %1972  ;;  %v3370_v19 = vld [vmem:[%s4207_s5 + $0x10] ss:$8 sps:$4 sm:$0xff]  }
 0x725   : > { %v2038_v9 = vsel %vm1656_vm2, %v4617_v44, %v1973_v45 }
 0x726   : > { %v2067_v46 = vpack.c.bf16 %v2058_v16, %v2057_v1  ;;  %v1975_v57 = vpop.permute.xlu1 %1974 }
 0x728   : > { %3180 = vmatpush3.bf16.msra.mxu1 %v2067_v46  ;;  %v1997_v6 = vpop.permute.xlu0 %1996 }
 0x729   : > { %3181 = vmatprep.subr.bf16.mxu1 %v3750_v5  ;;  %v2046_v48 = vsel %vm1770_vm3, %v2038_v9, %v1997_v6  ;;  %v3391_v9 = vld [vmem:[%s4209_s6 + $0x40] sm:$0xff]  }
 0x72a   : > { %v1999_v21 = vpop.permute.xlu1 %1998  ;;  %3095 = vmatprep.subr.bf16.mxu0 %v3391_v9 }
 0x72c   : > { %3182 = vmatpush3.bf16.msra.mxu1 %v2068_v13  ;;  %v1969_v2 = vpop.permute.xlu0 %1968 }
 0x72d   : > { %3183 = vmatprep.subr.bf16.mxu1 %v3750_v5  ;;  %v2036_v54 = vsel %vm1656_vm2, %v4620_v37, %v1969_v2  ;;  %v3373_v2 = vld [vmem:[%s4207_s5 + $0x20] ss:$8 sps:$4 sm:$0xff]  }
 0x72e   : > { %v1971_v20 = vpop.permute.xlu1 %1970 }
 0x72f   : > { %v2037_v60 = vsel %vm1656_vm2, %v4625_v29, %v1971_v20  ;;  %v2039_v29 = vsel %vm1656_vm2, %v4622_v39, %v1975_v57  ;;  %v3358_v39 = vld [vmem:[%s4984_s28] sm:$0xff]   ;;  %v3378_v20 = vld [vmem:[%s4207_s5 + $0x34] ss:$8 sps:$4 sm:$0xff]   ;;  %s2681_s28 = sshll.u32 %s4211_s7, 4  ;;  %s4787_s28 = int_to_ptr.vmem [resolvable:$true] %s2681_s28 }
 0x730   : > { %v1993_v23 = vpop.permute.xlu0 %1992  ;;  %v2047_v56 = vsel %vm1770_vm3, %v2039_v29, %v1999_v21  ;;  %v3375_v21 = vld [vmem:[%s4207_s5 + $0x24] ss:$8 sps:$4 sm:$0xff]   ;;  %s3631_s29 = scalar_lea.vmem %s4787_s28, 1024 }
 0x731   : > { %v2044_v62 = vsel %vm1770_vm3, %v2036_v54, %v1993_v23  ;;  %v3376_v23 = vld [vmem:[%s4207_s5 + $0x30] ss:$8 sps:$4 sm:$0xff]   ;;  %v3379_v54 = vld [vmem:[%s4207_s5 + $0x40] ss:$8 sps:$4 sm:$0xff]   ;;  %p3632_p5 = scmp.ne.s32.totalorder %s4787_s28, %s3631_s29 }
 0x732   : > { %v1995_v28 = vpop.permute.xlu1 %1994  ;;  %v3399_v29 = vld [vmem:[%s4209_s6 + $0x60] sm:$0xff]  }
 0x733   : > { %v2045_v27 = vsel %vm1770_vm3, %v2037_v60, %v1995_v28  ;;  %v3381_v28 = vld [vmem:[%s4207_s5 + $0x44] ss:$8 sps:$4 sm:$0xff]   ;;  %p3633_p7 = pnand %p3632_p5, %p4991_p1 }
 0x734   : > { %v2017_v8 = vpop.permute.xlu0 %2016  ;;  %v3387_v60 = vld [vmem:[%s4207_s5 + $0x64] ss:$8 sps:$4 sm:$0xff]  }
 0x735   : > { %v2053_v10 = vsel %vm2048_vm4, %v2044_v62, %v2017_v8  ;;  %v3384_v62 = vld [vmem:[%s4207_s5 + $0x54] ss:$8 sps:$4 sm:$0xff]   ;;  %v3382_v8 = vld [vmem:[%s4207_s5 + $0x50] ss:$8 sps:$4 sm:$0xff]   ;;  %p3634_p4 = pneg %p3633_p7 }
 0x736   : > { %v2019_v30 = vpop.permute.xlu1 %2018  ;;  %v2061_v37 = vmul.f32 %v3449_v51, %v2053_v10  ;;  %v3385_v10 = vld [vmem:[%s4207_s5 + $0x60] ss:$8 sps:$4 sm:$0xff]  }
 0x737   : > { %v2054_v42 = vsel %vm2048_vm4, %v2045_v27, %v2019_v30  ;;  %v3390_v27 = vld [vmem:[%s4207_s5 + $0x74] ss:$8 sps:$4 sm:$0xff]   ;;  %v3388_v30 = vld [vmem:[%s4207_s5 + $0x70] ss:$8 sps:$4 sm:$0xff]   ;;  %v3394_v51 = vld [vmem:[%s4209_s6 + $0x8] sm:$0xff]  }
 0x738   : > { %v2062_v55 = vmul.f32 %v3450_v31, %v2054_v42  ;;  %v2021_v32 = vpop.permute.xlu0 %2020  ;;  %v3392_v42 = vld [vmem:[%s4209_s6] sm:$0xff]   ;;  %v3396_v31 = vld [vmem:[%s4209_s6 + $0x10] sm:$0xff]  }
 0x739   : > { %v2055_v14 = vsel %vm2048_vm4, %v2046_v48, %v2021_v32  ;;  %v3393_v48 = vld [vmem:[%s4209_s6 + $0x48] sm:$0xff]   ;;  %v3398_v32 = vld [vmem:[%s4209_s6 + $0x18] sm:$0xff]  }
 0x73a   : > { %v2069_v58 = vpack.c.bf16 %v2062_v55, %v2061_v37  ;;  %v2023_v59 = vpop.permute.xlu1 %2022  ;;  %v2063_v0 = vmul.f32 %v3451_v61, %v2055_v14  ;;  %v3395_v37 = vld [vmem:[%s4209_s6 + $0x50] sm:$0xff]   ;;  %v3397_v55 = vld [vmem:[%s4209_s6 + $0x58] sm:$0xff]   ;;  %v3400_v14 = vld [vmem:[%s4209_s6 + $0x20] sm:$0xff]  }
 0x73b   : > { %v2056_v44 = vsel %vm2048_vm4, %v2047_v56, %v2023_v59  ;;  %v3401_v56 = vld [vmem:[%s4209_s6 + $0x68] sm:$0xff]  }
 0x73c   : > { %v2064_v38 = vmul.f32 %v3452_v3, %v2056_v44  ;;  %3184 = vmatpush3.bf16.msra.mxu1 %v2069_v58 }
 0x73d   : > { %3185 = vmatprep.subr.bf16.mxu1 %v3750_v5  ;;  %v2994_v5 = vld [vmem:[%s4985_s27] ss:$0 sm:$0xff]  ;;  %s3755_s27 = smov [#allocation12]  }
 0x73e   : > { %v2070_v50 = vpack.c.bf16 %v2064_v38, %v2063_v0  ;;  %s3635_s14 = sshll.u32 %s3755_s27, 4  ;;  %s3636_s14 = int_to_ptr.vmem [resolvable:$false] %s3635_s14 }
 0x73f   : > { %s3637_s5 = scalar_lea.vmem %s3636_s14, 2048  ;;  %p3638_p0 = scmp.lt.s32.totalorder %s4787_s28, %s3636_s14 }
 0x740   : > { %3186 = vmatpush3.bf16.msra.mxu1 %v2070_v50  ;;  %p3639_p3 = scmp.lt.s32.totalorder %s3637_s5, %s3631_s29 }
 0x741   : > { %2385 = vmatprep.subr.bf16.mxu1 %v3369_v17 }
 0x742   : > { %p3640_p11 = por %p3639_p3, %p3638_p0 }
 0x743   : > { %3188 = vmatmul.mubr.msk.bf16.vlgmr.msra.gmra.mrb[20].mxu1 %vm1770_vm3, %v3358_v39  ;;  %v3003_v39 = vld [vmem:[%s4986_s20] ss:$0 sm:$0xff] }
 0x744   : > { %2417 = vmatprep.mubr.bf16.mxu1 %v3749_v4  ;;  %2386 = vmatpush1.bf16.msra.mxu1 %v3367_v35  ;;  %p3641_p10 = pnand %p3640_p11, %p3634_p4 }
 0x745   : > { %2387 = vmatprep.subr.bf16.mxu1 %v3372_v63 }
 0x748   : > { %2388 = vmatpush1.bf16.msra.mxu1 %v3370_v19 }
 0x749   : > { %2389 = vmatprep.subr.bf16.mxu1 %v3375_v21 }
 0x74c   : > { %2390 = vmatpush1.bf16.msra.mxu1 %v3373_v2 }
 0x74d   : > { %2391 = vmatprep.subr.bf16.mxu1 %v3378_v20 }
 0x750   : > { %2392 = vmatpush1.bf16.msra.mxu1 %v3376_v23 }
 0x751   : > { %2393 = vmatprep.subr.bf16.mxu1 %v3381_v28 }
 0x754   : > { %2394 = vmatpush1.bf16.msra.mxu1 %v3379_v54 }
 0x755   : > { %2395 = vmatprep.subr.bf16.mxu1 %v3384_v62 }
 0x758   : > { %2396 = vmatpush1.bf16.msra.mxu1 %v3382_v8 }
 0x759   : > { %2397 = vmatprep.subr.bf16.mxu1 %v3387_v60 }
 0x75c   : > { %2398 = vmatpush1.bf16.msra.mxu1 %v3385_v10 }
 0x75d   : > { %2399 = vmatprep.subr.bf16.mxu1 %v3390_v27 }
 0x760   : > { %2400 = vmatpush1.bf16.msra.mxu1 %v3388_v30 }
 0x816   : > { %v2113_v49 = vpop.f32.mrb[20].mxu1 }
 0x817   : > { %v3189_v11 = vpop.f32.mrb[21].mxu1 }
 0x818   : > { %v2116_v12 = vpop.f32.mrb[22].mxu1 }
 0x819   : > { %v2120_v25 = vpack.c.bf16 %v2116_v12, %v2113_v49  ;;  %v3190_v40 = vpop.f32.mrb[23].mxu1  ;;  %v3004_v12 = vld [vmem:[%s4987_s18] ss:$0 sm:$0xff] }
 0x81b   : > { %3208 = vmatmul.mubr.bf16.vlgmr.msra.gmra.mrb[28].mxu0 %v2120_v25 }
 0x81c   : > { %3096 = vmatpush3.bf16.msra.mxu0 %v3392_v42 }
 0x81d   : > { %3097 = vmatprep.subr.bf16.mxu0 %v3393_v48 }
 0x820   : > { %3098 = vmatpush3.bf16.msra.mxu0 %v3394_v51 }
 0x821   : > { %3099 = vmatprep.subr.bf16.mxu0 %v3395_v37 }
 0x824   : > { %3100 = vmatpush3.bf16.msra.mxu0 %v3396_v31 }
 0x825   : > { %3101 = vmatprep.subr.bf16.mxu0 %v3397_v55 }
 0x828   : > { %3102 = vmatpush3.bf16.msra.mxu0 %v3398_v32 }
 0x829   : > { %3103 = vmatprep.subr.bf16.mxu0 %v3399_v29 }
 0x82c   : > { %3104 = vmatpush3.bf16.msra.mxu0 %v3400_v14 }
 0x82d   : > { %3105 = vmatprep.subr.bf16.mxu0 %v3401_v56 }
 0x8ee   : > { %v2226_v41 = vpop.f32.mrb[28].mxu0 }
 0x8ef   : > { %v2227_v13 = vadd.f32 %v2994_v5, %v2226_v41  ;;  %v3209_v4 = vpop.f32.mrb[29].mxu0 }
 0x8f0   : > { %v2229_v26 = vpop.f32.mrb[30].mxu0  ;;  %v3403_v4 = vld [vmem:[%s4209_s6 + $0x70] sm:$0xff]  }
 0x8f1   : > { %v2233_v15 = vadd.f32 %v3453_v53, %v2227_v13  ;;  %v2230_v18 = vadd.f32 %v2994_v5, %v2229_v26  ;;  %v3210_v22 = vpop.f32.mrb[31].mxu0  ;;  %v3402_v13 = vld [vmem:[%s4209_s6 + $0x28] sm:$0xff]   ;;  %v3404_v26 = vld [vmem:[%s4209_s6 + $0x30] sm:$0xff]   ;;  %v3405_v53 = vld [vmem:[%s4209_s6 + $0x78] sm:$0xff]  }
 0x8f2   : > { %3106 = vmatpush3.bf16.msra.mxu0 %v3402_v13 }
 0x8f3   : > { %v2234_v24 = vadd.f32 %v3454_v52, %v2230_v18  ;;  %2237 = vadd.xlane.f32.xlu0 %v2233_v15  ;;  %3107 = vmatprep.subr.bf16.mxu0 %v3403_v4  ;;  %v2293_v18 = vld [vmem:[%s4191_s4] sm:$0x3] }
 0x8f4   : > { %v2298_v22 = vrot.slane %v2293_v18, %v897_v34  ;;  %v2302_v52 = vrot.slane %v2293_v18, %v901_v36 }
 0x8f5   : > { %2239 = vadd.xlane.f32.xlu1 %v2234_v24 }
 0x8f6   : > { %3108 = vmatpush3.bf16.msra.mxu0 %v3404_v26 }
 0x8f7   : > { %3109 = vmatprep.subr.bf16.mxu0 %v3405_v53 }
 0x980   : > { %v2238_v43 = vpop.xlane.xlu0 %2237 }
 0x981   : > { %v2242_v1 = vmul.f32 0.0078125, %v2238_v43 }
 0x982   : > { %v2240_v7 = vpop.xlane.xlu1 %2239 }
 0x983   : > { %v2244_v16 = vsub.f32 %v2233_v15, %v2242_v1  ;;  %v2243_v45 = vmul.f32 0.0078125, %v2240_v7  ;;  %v3406_v15 = vld [vmem:[%s4209_s6 + $0x38] sm:$0xff]  }
 0x984   : > { %3110 = vmatpush3.bf16.msra.mxu0 %v3406_v15 }
 0x985   : > { %v4727_v46 = vsub.f32 %v2234_v24, %v2243_v45  ;;  %v2246_v57 = vmul.f32 %v2244_v16, %v2244_v16 }
 0x987   : > { %2248 = vadd.xlane.f32.xlu0 %v2246_v57  ;;  %v2247_v6 = vmul.f32 %v4727_v46, %v4727_v46 }
 0x98b   : > { %2250 = vadd.xlane.f32.xlu0 %v2247_v6 }
 0xa14   : > { %v2249_v58 = vpop.xlane.xlu0 %2248 }
 0xa15   : > { %v2252_v59 = vmul.f32 0.0078125, %v2249_v58 }
 0xa17   : > { %v2254_v44 = vadd.f32 1e-05, %v2252_v59 }
 0xa18   : > { %v2251_v61 = vpop.xlane.xlu0 %2250 }
 0xa19   : > { %3439 = vrsqrt.f32 %v2254_v44  ;;  %v2253_v0 = vmul.f32 0.0078125, %v2251_v61 }
 0xa1b   : > { %v2255_v3 = vadd.f32 1e-05, %v2253_v0 }
 0xa1d   : > { %3441 = vrsqrt.f32 %v2255_v3 }
 0xa23   : > { %v3440_v38 = vpop.eup %3439 }
 0xa24   : > { %v2258_v50 = vmul.f32 %v3440_v38, %v2244_v16 }
 0xa26   : > { %v2266_v11 = vmul.f32 %v3003_v39, %v2258_v50 }
 0xa27   : > { %v3442_v47 = vpop.eup %3441 }
 0xa28   : > { %v2259_v49 = vmul.f32 %v3442_v47, %v4727_v46  ;;  %v2274_v40 = vadd.f32 %v3004_v12, %v2266_v11 }
 0xa2a   : > { %v2267_v25 = vmul.f32 %v3003_v39, %v2259_v49 }
 0xa2c   : > { %v2275_v5 = vadd.f32 %v3004_v12, %v2267_v25 }
 0xa2e   : > { %v2276_v41 = vpack.c.bf16 %v2275_v5, %v2274_v40 }
 0xa30   : > { %2418 = vmatmul.mubr.bf16.vlgmr.msra.gmra.mrb[24].mxu1 %v2276_v41 }
 0xb03   : > { %v2419_v24 = vpop.f32.mrb[24].mxu1 }
 0xb04   : > { %v2420_v35 = vadd.f32 %v2419_v24, %v2298_v22  ;;  %v2421_v17 = vpop.f32.mrb[25].mxu1 }
 0xb05   : > { %v2422_v63 = vadd.f32 %v2421_v17, %v2302_v52  ;;  %v2423_v19 = vpop.f32.mrb[26].mxu1 }
 0xb06   : > { %v2424_v43 = vadd.f32 %v2423_v19, %v2298_v22  ;;  %v2425_v1 = vpop.f32.mrb[27].mxu1  ;;  %v2428_v16 = vmax.f32 %v2420_v35, 0.0 }
 0xb07   : > { %v2426_v7 = vadd.f32 %v2425_v1, %v2302_v52  ;;  %v2429_v46 = vmax.f32 %v2422_v63, 0.0 }
 0xb08   : > { %v2430_v45 = vmax.f32 %v2424_v43, 0.0 }
 0xb09   : > { %v2431_v57 = vmax.f32 %v2426_v7, 0.0 }
 0xb0a   : > { %v2432_v6 = vpack.c.bf16 %v2430_v45, %v2428_v16 }
 0xb0b   : > { %v2433_v21 = vpack.c.bf16 %v2431_v57, %v2429_v46 }
 0xb0d   : > { %2601 = vmatprep.mubr.bf16.mxu0 %v2433_v21 }
 0xb0e   : > { %2602 = vmatmul.mubr.bf16.vlgmr.msra.gmra.mrb[32].mxu0 %v2432_v6 }
 0xbe1   : > { %v3111_v34 = vpop.f32.mrb[32].mxu0 }
 0xbe2   : > { %v3112_v36 = vpop.f32.mrb[33].mxu0 }
 0xbe3   : > { %v3113_v2 = vadd.f32 %v3112_v36, %v3111_v34  ;;  %v3114_v20 = vpop.f32.mrb[34].mxu0 }
 0xbe4   : > { %v3115_v23 = vpop.f32.mrb[35].mxu0 }
 0xbe5   : > { %v2604_v28 = vadd.f32 %v3113_v2, %v3021_v33  ;;  %v3116_v54 = vadd.f32 %v3115_v23, %v3114_v20 }
 0xbe7   : > { %v2607_v62 = vadd.f32 %v3116_v54, %v3021_v33  ;;  %v2610_v8 = vadd.f32 %v2604_v28, %v2274_v40 }
 0xbe9   : > { %2614 = vadd.xlane.f32.xlu1 %v2610_v8  ;;  %v2611_v60 = vadd.f32 %v2607_v62, %v2275_v5 }
 0xbeb   : > { %2616 = vadd.xlane.f32.xlu0 %v2611_v60 }
 0xc76   : > { %v2615_v10 = vpop.xlane.xlu1 %2614 }
 0xc77   : > { %v2618_v27 = vmul.f32 0.0078125, %v2615_v10 }
 0xc78   : > { %v2617_v30 = vpop.xlane.xlu0 %2616 }
 0xc79   : > { %v2620_v9 = vsub.f32 %v2610_v8, %v2618_v27  ;;  %v2619_v42 = vmul.f32 0.0078125, %v2617_v30 }
 0xc7b   : > { %v2621_v48 = vsub.f32 %v2611_v60, %v2619_v42  ;;  %v2622_v51 = vmul.f32 %v2620_v9, %v2620_v9 }
 0xc7d   : > { %2624 = vadd.xlane.f32.xlu1 %v2622_v51  ;;  %v2623_v37 = vmul.f32 %v2621_v48, %v2621_v48 }
 0xc7f   : > { %2626 = vadd.xlane.f32.xlu0 %v2623_v37 }
 0xc80   : > { %3644 = shalt.err (!%p3641_p10)
}
 0xc81   : > { %s3645_s7 = scalar_lea.hbm %s4784_s25, 1024  ;;  %s3649_s23 = scalar_lea.hbm %s4990_s13, 2048 }
 0xc82   : > { %p3646_p12 = scmp.ne.s32.totalorder %s4784_s25, %s3645_s7  ;;  %p3650_p13 = scmp.lt.u32.totalorder %s4784_s25, %s4990_s13 }
 0xc83   : > { %p3651_p2 = scmp.lt.u32.totalorder %s3649_s23, %s3645_s7  ;;  %p3653_p5 = scmp.lt.u32.totalorder %s3645_s7, %s4784_s25 }
 0xc84   : > { %p3647_p8 = pnand %p3646_p12, %p4991_p1 }
 0xc85   : > { %p3652_p6 = por %p3651_p2, %p3650_p13 }
 0xc86   : > { %p3648_p9 = pneg %p3647_p8 }
 0xc87   : > { %p3654_p7 = por %p3653_p5, %p3652_p6 }
 0xc89   : > { %p3655_p4 = pnand %p3654_p7, %p3648_p9 }
 0xc8b   : > { %3658 = shalt.err (!%p3655_p4)
}
 0xc8c   : > { %s3756_s6 = smov 128   ;;  %s3757_s2 = smov 8   ;;  %v3038_v59 = vld [vmem:[%s845_s15] ss:$0 sm:$0xff] }
 0xc8d   : > { %3237 = dma.vmem_to_hbm [thread:$0]  (%p4991_p1), %s4787_s28, 1024, %s4784_s25, %s2655_s11, %s3756_s6, %s3756_s6, %s3757_s2  }
 0xc8e   : > { %v3039_v0 = vld [vmem:[%s848_s19] ss:$0 sm:$0xff]  ;;  %s3758_s28 = smov [#allocation11]   ;;  %p4994_p0 = scmp.eq.s32.totalorder %s3875_s0, 1 }
 0xc8f   : > { %s2665_s11 = sshll.u32 %s3758_s28, 4  ;;  %s2666_s11 = int_to_ptr.vmem [resolvable:$true] %s2665_s11 }
 0xc90   : > { %s3659_s29 = scalar_lea.vmem %s2666_s11, 256  ;;  %p3666_p10 = scmp.lt.s32.totalorder %s2666_s11, %s2666_s11 }
 0xc91   : > { %p3660_p1 = scmp.ne.s32.totalorder %s2666_s11, %s3659_s29  ;;  %p3667_p12 = scmp.lt.s32.totalorder %s3659_s29, %s3659_s29 }
 0xc93   : > { %p3661_p3 = pnand %p3660_p1, %p4994_p0  ;;  %p3668_p8 = por %p3667_p12, %p3666_p10 }
 0xc95   : > { %p3662_p11 = pneg %p3661_p3 }
 0xc97   : > { %p3669_p9 = pnand %p3668_p8, %p3662_p11 }
 0xd0a   : > { %v2625_v31 = vpop.xlane.xlu1 %2624 }
 0xd0b   : > { %v2628_v55 = vmul.f32 0.0078125, %v2625_v31 }
 0xd0c   : > { %v2627_v32 = vpop.xlane.xlu0 %2626 }
 0xd0d   : > { %v2630_v29 = vadd.f32 1e-05, %v2628_v55  ;;  %v2629_v14 = vmul.f32 0.0078125, %v2627_v32 }
 0xd0f   : > { %3443 = vrsqrt.f32 %v2630_v29  ;;  %v2631_v56 = vadd.f32 1e-05, %v2629_v14 }
 0xd11   : > { %3445 = vrsqrt.f32 %v2631_v56 }
 0xd19   : > { %v3444_v58 = vpop.eup %3443 }
 0xd1a   : > { %v2634_v44 = vmul.f32 %v3444_v58, %v2620_v9 }
 0xd1b   : > { %v3446_v61 = vpop.eup %3445 }
 0xd1c   : > { %v2635_v3 = vmul.f32 %v3446_v61, %v2621_v48  ;;  %v2642_v38 = vmul.f32 %v3038_v59, %v2634_v44 }
 0xd1e   : > { %v2643_v50 = vmul.f32 %v3038_v59, %v2635_v3  ;;  %v2650_v39 = vadd.f32 %v3039_v0, %v2642_v38 }
 0xd20   : > { %v2651_v47 = vadd.f32 %v3039_v0, %v2643_v50  ;;  %2652 = vst [vmem:[#allocation11] sm:$0xff] %v2650_v39 }
 0xd22   : > { %2653 = vst [vmem:[#allocation11 + $0x8] sm:$0xff] %v2651_v47 }
 0xd23   : > { %3672 = shalt.err (!%p3669_p9)
}
 0xd24   : > { %s4995_s19 = sld [smem:[#allocation40_spill]]  ;;  %p4996_p2 = pmov %p4994_p0 }
 0xd2a   : > { %s3673_s27 = scalar_lea.hbm %s4995_s19, 256 }
 0xd2b   : > { %p3674_p13 = scmp.ne.s32.totalorder %s4995_s19, %s3673_s27  ;;  %p3679_p7 = scmp.lt.u32.totalorder %s3673_s27, %s4995_s19 }
 0xd2d   : > { %p3675_p6 = pnand %p3674_p13, %p4996_p2 }
 0xd2f   : > { %p3676_p5 = pneg %p3675_p6 }
 0xd31   : > { %p3681_p4 = pnand %p3679_p7, %p3676_p5 }
 0xd33   : > { %3684 = shalt.err (!%p3681_p4)
}
 0xd34   : > { %p4997_p1 = pmov %p4994_p0 }
 0xd36   : > { %3236 = dma.vmem_to_hbm [thread:$0]  (%p4997_p1), %s2666_s11, 256, %s4995_s19, [#allocation4], %s3756_s6, %s3756_s6, %s3757_s2  }
 0xd37   : > { %3714 = dma.done.wait (%p4994_p0), [#allocation4], 256   ;;  %p4998_p3 = pmov %p4994_p0 }
 0xd39   : > { %3716 = vsyncadd (%p4998_p3), [#allocation4], 4294967040 }
 0xd3a PF: > { %s4999_s18 = sld [smem:[#allocation19_spill]]  ;;  %s5000_s4 = sld [smem:[#allocation25_spill]] }
 0xd3b   : > { %p5002_p10 = scmp.ge.s32.totalorder %s3735_s30, 2 }
 0xd40   : > { %s2700_s1 = sand.u32 1, %s4999_s18   ;;  %p5001_p11 = scmp.ne.s32.totalorder %s5000_s4, 0 }
 0xd41   : > { %s2701_s21 = scalar_lea.sflag [#allocation13], %s2700_s1 }
 0xd42   : > { %p3262_p12 = pnand %p5002_p10, %p5001_p11 }
 0xd44   : > { %3718 = dma.done.wait (!%p3262_p12), %s2701_s21, 1024  }
 0xd45   : > { %3720 = vsyncadd (!%p3262_p12), %s2701_s21, 4294966272  ;;  %s5003_s30 = sld [smem:[#allocation22_spill]]  ;;  %s5004_s27 = sld [smem:[#allocation20_spill]] }
 0xd46   : > { %s5005_s28 = sld [smem:[#allocation21_spill]]  ;;  %s5006_s29 = sld [smem:[#allocation23_spill]] }
 0xd4b   : > { %p32_p8 = scmp.ge.s32.totalorder %s5003_s30, 4  }
 0xd4d   :  { %34 = sbr.rel (!%p32_p8) target bundleno = 23 (0x17), region = 210 }
 0xd54   :  { %2706 = vsyncpa [#allocation3], 1 }
 0xd55   :  { %2708 = vsyncpa [#allocation3 + $0x1], 1 }
 0xd56   :  { %2709 = vsyncpa [#allocation6], 1 }
 0xd57   :  { %2710 = vsyncpa [#allocation4], 1 }
 0xd58   :  { %2712 = vsyncpa [#allocation4 + $0x1], 1 }
 0xd59   :  { %2713 = vsyncpa [#allocation13], 1 }
 0xd5a   :  { %2715 = vsyncpa [#allocation13 + $0x1], 1 }

</bundles_post_ra>
